<compile_context>
chip_gen: v7x
topology: tpu7x:2x2x1
jax: 0.10.0
libtpu: 0.0.40
codegen_flags: <defaults>
</compile_context>

<pallas_src>
import jax
import jax.numpy as jnp
from jax.experimental import pallas as pl
from jax.experimental.pallas import tpu as pltpu

_LANE = 128                       # lane width / batch-tile granularity
_X_TILE_BYTES_CAP = 8 * 1024 * 1024  # per-buffer cap for the f32 x tile (double-buffered)


def _round_up(v, m):
    return ((v + m - 1) // m) * m


def policy_kernel(x_ref, w1_ref, b1_ref, w2_ref, b2_ref, out_ref):
    # x_ref : (TM, IN)   f32   -- this grid step's slice of the batch
    # w1_ref: (IN, H)    bf16  -- VMEM-resident across all grid steps
    # b1_ref: (1, H)     f32   -- VMEM-resident
    # w2_ref: (1, H)     f32   -- VMEM-resident (PyTorch Linear(H, 1) weight row)
    # b2_ref: (1,)       f32   -- SMEM scalar
    # out_ref: (1, TM)   f32   -- lane-dense slab of probabilities

    # In-kernel bf16 cast of x (kills the wrapper-side cast pass over HBM),
    # bf16 MXU matmul with f32 accumulation.
    x_bf = x_ref[...].astype(jnp.bfloat16)
    h = jnp.dot(x_bf, w1_ref[...], preferred_element_type=jnp.float32)
    # Bias + ReLU stay in f32 (v5e VPU has no bf16 path).
    h = jnp.maximum(h + b1_ref[...], 0.0)                       # (TM, H) f32

    # Layer 2 (N=1): VPU multiply + lane reduction instead of a 1-column MXU
    # matmul; scalar bias read from SMEM.
    logit = jnp.sum(h * w2_ref[...], axis=-1) + b2_ref[0]       # (TM,) f32

    out_ref[0, :] = jax.nn.sigmoid(logit)                       # f32 sigmoid (EUP)


@jax.jit
def policy_network_forward(x, w1, b1, w2, b2):
    """Pong policy forward pass (PyTorch nn.Linear parameter layouts).

    x : (B, input_size)       f32 observations
    w1: (hidden, input_size)  f32  -- fc1.weight
    b1: (hidden,)             f32  -- fc1.bias
    w2: (1, hidden)           f32  -- fc2.weight
    b2: (1,)                  f32  -- fc2.bias
    Returns prob_up: (B, 1) f32.
    """
    B, in_size = x.shape
    hidden = w1.shape[0]

    # Tile choice: at most 2 grid steps (one per v7x TensorCore; 1 step on tiny
    # batches), TM a multiple of 128, capped so the f32 x tile (double-buffered
    # by the BlockSpec pipeline) stays far under the scoped-VMEM default on all
    # generations even if input_size grows to the real Pong 6400.
    tm_cap = max(_LANE, (_X_TILE_BYTES_CAP // (in_size * 4)) // _LANE * _LANE)
    tm = min(_round_up(pl.cdiv(B, 2), _LANE), tm_cap)
    num_tiles = pl.cdiv(B, tm)
    b_pad = num_tiles * tm
    if b_pad != B:
        x = jnp.pad(x, ((0, b_pad - B), (0, 0)))  # padded rows discarded below

    # Small parameter prep (tiny, one fused XLA op): W1 transposed + bf16 for
    # the MXU; biases / W2 row stay f32 for the VPU/EUP path.
    w1_t = w1.T.astype(jnp.bfloat16)                  # (in, hidden)
    b1_r = b1.reshape(1, hidden).astype(jnp.float32)
    w2_r = w2.reshape(1, hidden).astype(jnp.float32)
    b2_r = b2.reshape(1).astype(jnp.float32)

    cost = pl.CostEstimate(
        flops=2 * b_pad * in_size * hidden + 2 * b_pad * hidden,
        transcendentals=b_pad,  # one sigmoid per row
        bytes_accessed=(b_pad * in_size * 4          # x (f32, read in-kernel)
                        + in_size * hidden * 2       # W1 bf16
                        + hidden * 4 + hidden * 4 + 4  # b1, w2, b2
                        + b_pad * 4),                # output slab
    )

    probs = pl.pallas_call(
        policy_kernel,
        out_shape=jax.ShapeDtypeStruct((1, b_pad), jnp.float32),
        grid=(num_tiles,),
        in_specs=[
            # x: one (TM, in) f32 tile per grid step (auto double-buffered).
            pl.BlockSpec((tm, in_size), lambda i: (i, 0)),
            # Weights / biases: constant index_map => DMA'd once, VMEM-resident.
            pl.BlockSpec((in_size, hidden), lambda i: (0, 0)),
            pl.BlockSpec((1, hidden), lambda i: (0, 0)),
            pl.BlockSpec((1, hidden), lambda i: (0, 0)),
            # b2: single scalar via SMEM.
            pl.BlockSpec(memory_space=pltpu.MemorySpace.SMEM),
        ],
        # Lane-dense output: each step writes a (1, TM) row segment.
        out_specs=pl.BlockSpec((1, tm), lambda i: (0, i)),
        compiler_params=pltpu.CompilerParams(
            dimension_semantics=("parallel",),
        ),
        cost_estimate=cost,
    )(x, w1_t, b1_r, w2_r, b2_r)

    return probs[0, :B].reshape(B, 1)


def reference_forward_f32(x, w1, b1, w2, b2):
    """Pure-f32 reference matching the PyTorch module exactly."""
    h = jnp.maximum(x @ w1.T + b1, 0.0)
    return jax.nn.sigmoid(h @ w2.T + b2)


def reference_forward_bf16(x, w1, b1, w2, b2):
    """Reference using the same bf16 MXU operands / f32 accumulation as the kernel."""
    h = jnp.dot(x.astype(jnp.bfloat16), w1.T.astype(jnp.bfloat16),
                preferred_element_type=jnp.float32)
    h = jnp.maximum(h + b1.reshape(1, -1), 0.0)
    logit = jnp.sum(h * w2.reshape(1, -1), axis=-1, keepdims=True) + b2.reshape(1, 1)
    return jax.nn.sigmoid(logit)


if __name__ == "__main__":
    # Small module sizes; batch chosen to exercise both the pad path and the
    # 2-step "parallel" grid (500 -> pads to 512 -> 2 tiles of 256 rows).
    input_size, hidden_size = 256, 128
    batch = 500

    key = jax.random.PRNGKey(0)
    kx, kw1, kb1, kw2, kb2 = jax.random.split(key, 5)

    x = jax.random.normal(kx, (batch, input_size), dtype=jnp.float32)
    # PyTorch nn.Linear parameter layouts.
    w1 = jax.random.normal(kw1, (hidden_size, input_size), dtype=jnp.float32) * 0.02
    b1 = jax.random.normal(kb1, (hidden_size,), dtype=jnp.float32) * 0.01
    w2 = jax.random.normal(kw2, (1, hidden_size), dtype=jnp.float32) * 0.02
    b2 = jax.random.normal(kb2, (1,), dtype=jnp.float32) * 0.01

    prob_up = jax.block_until_ready(policy_network_forward(x, w1, b1, w2, b2))
    assert prob_up.shape == (batch, 1)

    # Tight check against a reference with identical bf16 MXU operands.
    ref_bf = reference_forward_bf16(x, w1, b1, w2, b2)
    assert jnp.allclose(prob_up, ref_bf, atol=1e-4, rtol=1e-4), \
        float(jnp.max(jnp.abs(prob_up - ref_bf)))

    # Loose sanity check against the pure-f32 PyTorch-equivalent math.
    ref_f32 = reference_forward_f32(x, w1, b1, w2, b2)
    assert jnp.allclose(prob_up, ref_f32, atol=1e-2), \
        float(jnp.max(jnp.abs(prob_up - ref_f32)))

    print("KERNEL_OK")
</pallas_src>

<mosaic_0001>
module attributes {stable_mosaic.version = 11 : i64} {
  func.func @policy_kernel(%arg0: i32, %arg1: memref<256x256xf32, #tpu.memory_space<vmem>>, %arg2: memref<256x128xbf16, #tpu.memory_space<vmem>>, %arg3: memref<1x128xf32, #tpu.memory_space<vmem>>, %arg4: memref<1x128xf32, #tpu.memory_space<vmem>>, %arg5: memref<1xf32, #tpu.memory_space<smem>>, %arg6: memref<1x256xf32, #tpu.memory_space<vmem>>) attributes {dimension_semantics = [#tpu.dimension_semantics<parallel>], iteration_bounds = array<i64: 2>, scalar_prefetch = 0 : i64, scratch_operands = 0 : i64, tpu.core_type = #tpu.core_type<tc>, window_params = [{transform_indices = @transform_0, window_bounds = array<i64: 256, 256>}, {pipeline_mode = #tpu.pipeline_mode<synchronous>, transform_indices = @transform_1, window_bounds = array<i64: 256, 128>}, {pipeline_mode = #tpu.pipeline_mode<synchronous>, transform_indices = @transform_2, window_bounds = array<i64: 1, 128>}, {pipeline_mode = #tpu.pipeline_mode<synchronous>, transform_indices = @transform_3, window_bounds = array<i64: 1, 128>}, {transform_indices = @transform_4, window_bounds = array<i64: 1>}, {transform_indices = @transform_5, window_bounds = array<i64: 1, 256>}]} {
    %c0 = arith.constant 0 : index
    %c0_0 = arith.constant 0 : index
    %0 = vector.load %arg1[%c0, %c0_0] : memref<256x256xf32, #tpu.memory_space<vmem>>, vector<256x256xf32>
    %1 = arith.truncf %0 : vector<256x256xf32> to vector<256x256xbf16>
    %c0_1 = arith.constant 0 : index
    %c0_2 = arith.constant 0 : index
    %2 = vector.load %arg2[%c0_1, %c0_2] : memref<256x128xbf16, #tpu.memory_space<vmem>>, vector<256x128xbf16>
    %cst = arith.constant dense<0.000000e+00> : vector<256x128xf32>
    %3 = tpu.matmul %1, %2, %cst {dimension_numbers = #tpu.dot_dimension_numbers<[1], [0], [0], [1], [0, 0, 1, 1], [], []>} : vector<256x256xbf16>, vector<256x128xbf16>, vector<256x128xf32> -> vector<256x128xf32>
    %c0_3 = arith.constant 0 : index
    %c0_4 = arith.constant 0 : index
    %4 = vector.load %arg3[%c0_3, %c0_4] : memref<1x128xf32, #tpu.memory_space<vmem>>, vector<1x128xf32>
    %5 = vector.broadcast %4 : vector<1x128xf32> to vector<256x128xf32>
    %6 = arith.addf %3, %5 : vector<256x128xf32>
    %cst_5 = arith.constant 0.000000e+00 : f32
    %7 = vector.broadcast %cst_5 : f32 to vector<256x128xf32>
    %8 = arith.maximumf %6, %7 : vector<256x128xf32>
    %c0_6 = arith.constant 0 : index
    %c0_7 = arith.constant 0 : index
    %9 = vector.load %arg4[%c0_6, %c0_7] : memref<1x128xf32, #tpu.memory_space<vmem>>, vector<1x128xf32>
    %10 = vector.broadcast %9 : vector<1x128xf32> to vector<256x128xf32>
    %11 = arith.mulf %8, %10 : vector<256x128xf32>
    %cst_8 = arith.constant dense<0.000000e+00> : vector<256xf32>
    %12 = vector.multi_reduction <add>, %11, %cst_8 [1] : vector<256x128xf32> to vector<256xf32>
    %c0_9 = arith.constant 0 : index
    %13 = memref.load %arg5[%c0_9] : memref<1xf32, #tpu.memory_space<smem>>
    %14 = vector.broadcast %13 : f32 to vector<256xf32>
    %15 = arith.addf %12, %14 : vector<256xf32>
    %16 = arith.negf %15 : vector<256xf32>
    %17 = math.exp %16 : vector<256xf32>
    %cst_10 = arith.constant 1.000000e+00 : f32
    %18 = vector.broadcast %cst_10 : f32 to vector<256xf32>
    %19 = arith.addf %18, %17 : vector<256xf32>
    %20 = arith.divf %18, %19 : vector<256xf32>
    %c0_11 = arith.constant 0 : index
    %c0_12 = arith.constant 0 : index
    %21 = vector.load %arg6[%c0_11, %c0_12] : memref<1x256xf32, #tpu.memory_space<vmem>>, vector<1x256xf32>
    %22 = vector.shape_cast %21 : vector<1x256xf32> to vector<256xf32>
    %23 = vector.shape_cast %20 : vector<256xf32> to vector<1x256xf32>
    tpu.vector_store %arg6[%c0_11, %c0_12], %23 {strides = array<i32>} : memref<1x256xf32, #tpu.memory_space<vmem>>, vector<1x256xf32>,
    return
  }
  func.func @transform_0(%arg0: i32) -> (i32, i32) {
    %c0_i32 = arith.constant 0 : i32
    %c0_i32_0 = arith.constant 0 : i32
    return %arg0, %c0_i32 : i32, i32
  }
  func.func @transform_1(%arg0: i32) -> (i32, i32) {
    %c0_i32 = arith.constant 0 : i32
    %c0_i32_0 = arith.constant 0 : i32
    %c0_i32_1 = arith.constant 0 : i32
    return %c0_i32, %c0_i32_0 : i32, i32
  }
  func.func @transform_2(%arg0: i32) -> (i32, i32) {
    %c0_i32 = arith.constant 0 : i32
    %c0_i32_0 = arith.constant 0 : i32
    %c0_i32_1 = arith.constant 0 : i32
    return %c0_i32, %c0_i32_0 : i32, i32
  }
  func.func @transform_3(%arg0: i32) -> (i32, i32) {
    %c0_i32 = arith.constant 0 : i32
    %c0_i32_0 = arith.constant 0 : i32
    %c0_i32_1 = arith.constant 0 : i32
    return %c0_i32, %c0_i32_0 : i32, i32
  }
  func.func @transform_4(%arg0: i32) -> i32 {
    %c0_i32 = arith.constant 0 : i32
    %c0_i32_0 = arith.constant 0 : i32
    return %c0_i32 : i32
  }
  func.func @transform_5(%arg0: i32) -> (i32, i32) {
    %c0_i32 = arith.constant 0 : i32
    %c0_i32_0 = arith.constant 0 : i32
    return %c0_i32, %arg0 : i32, i32
  }
}

</mosaic_0001>

<bundles_post_ra>
// kernel: policy_network_forward.1
= control target key start
LH: loop header
LB: loop body
LE: loop exit
PB: predicated region body
PF: predicated region fallthrough
CT: control target
= control target key end

     0   :  { %s4354_s20 = smov 0   ;;  %s5504_s0 = inlined_call_operand.vmem [shape: f32[512,256], index: 0, kind: input, shape index: {}]   ;;  %s5505_s1 = inlined_call_operand.vmem [shape: bf16[256,128], index: 1, kind: input, shape index: {}]   ;;  %s5506_s2 = inlined_call_operand.vmem [shape: f32[1,128], index: 2, kind: input, shape index: {}]   ;;  %s5507_s3 = inlined_call_operand.vmem [shape: f32[1,128], index: 3, kind: input, shape index: {}]   ;;  %s5508_s4 = inlined_call_operand.<no memory space> [shape: f32[1], index: 4, kind: input, shape index: {}]   ;;  %s5509_s5 = inlined_call_operand.vmem [shape: f32[1,512], index: 5, kind: output, shape index: {}]  }
   0x1   :  { %10 = sst [smem:[#allocation2]] %s5508_s4 }
   0x2 LB: > { %s3965_s21 = sadd.s32 4294967295, %s4317_s20   ;;  %p3969_p0 = scmp.ge.s32.totalorder %s4317_s20, 1  ;;  %s4317_s20 = sphi %s4354_s20, %s16_s20  }
   0x3   : > { %p190_p1 = scmp.lt.s32.totalorder %s4317_s20, 3 }
   0x5   : > { %p191_p2 = pnand %p3969_p0, %p190_p1 }
   0x6   : > { %v4167_v0 = vld [vmem:[%s5505_s1 + $0x40] sm:$0xff] (!%p191_p2)   ;;  %s3970_s4 = sshll.u32 (!%p191_p2), %s3965_s21, 5  ;;  %v4169_v2 = vld [vmem:[%s5505_s1 + $0x48] sm:$0xff] (!%p191_p2)   ;;  %v4171_v4 = vld [vmem:[%s5505_s1 + $0x50] sm:$0xff] (!%p191_p2)   ;;  %s758_s13 = sld [smem:[#allocation2]] (!%p191_p2)  ;;  %vm3715_vm0 = vcmask (!%p191_p2), 130112  }
   0x7   : > { %194 = sbr.rel (%p191_p2) target bundleno = 771 (0x303), region = 40  ;;  %v4168_v1 = vld [vmem:[%s5505_s1] sm:$0xff] (!%p191_p2)   ;;  %4027 = vmatprep.subr.bf16.mxu0 (!%p191_p2), %v4167_v0  ;;  %4139 = vmatprep.subr.bf16.mxu1 (!%p191_p2), %v4167_v0  ;;  %p219_p3 = scmp.lt.s32.totalorder (!%p191_p2), %s3970_s4, 63  ;;  %v4170_v3 = vld [vmem:[%s5505_s1 + $0x8] sm:$0xff] (!%p191_p2)   ;;  %v4172_v5 = vld [vmem:[%s5505_s1 + $0x10] sm:$0xff] (!%p191_p2)   ;;  %vm3722_vm1 = vcmask (!%p191_p2), 195712  }
   0x8   : > { %4028 = vmatpush3.bf16.msra.mxu0 (!%p191_p2), %v4168_v1  ;;  %4147 = vmatpush3.bf16.msra.mxu1 (!%p191_p2), %v4168_v1  ;;  %v4173_v6 = vld [vmem:[%s5505_s1 + $0x58] sm:$0xff] (!%p191_p2)   ;;  %v4175_v8 = vld [vmem:[%s5505_s1 + $0x60] sm:$0xff] (!%p191_p2)   ;;  %v4177_v10 = vld [vmem:[%s5505_s1 + $0x68] sm:$0xff] (!%p191_p2)   ;;  %vm3729_vm2 = vcmask (!%p191_p2), 261312   ;;  %vm3736_vm3 = vcmask (!%p191_p2), 326912   ;;  %vm3743_vm4 = vcmask (!%p191_p2), 392512  }
   0x9   : > { %4029 = vmatprep.subr.bf16.mxu0 (!%p191_p2), %v4169_v2  ;;  %4140 = vmatprep.subr.bf16.mxu1 (!%p191_p2), %v4169_v2  ;;  %v4174_v7 = vld [vmem:[%s5505_s1 + $0x18] sm:$0xff] (!%p191_p2)   ;;  %v4176_v9 = vld [vmem:[%s5505_s1 + $0x20] sm:$0xff] (!%p191_p2)   ;;  %v4178_v17 = vld [vmem:[%s5505_s1 + $0x28] sm:$0xff] (!%p191_p2)   ;;  %vm3750_vm5 = vcmask (!%p191_p2), 458112   ;;  %vm3757_vm6 = vcmask (!%p191_p2), 523712   ;;  %vm3764_vm7 = vcmask (!%p191_p2), 589312  }
   0xa   : > { %v4179_v18 = vld [vmem:[%s5505_s1 + $0x70] sm:$0xff] (!%p191_p2)   ;;  %v4181_v20 = vld [vmem:[%s5505_s1 + $0x78] sm:$0xff] (!%p191_p2)   ;;  %vm3771_vm8 = vcmask (!%p191_p2), 654912   ;;  %vm3778_vm9 = vcmask (!%p191_p2), 720512   ;;  %vm3785_vm10 = vcmask (!%p191_p2), 786112   ;;  %vm3792_vm11 = vcmask (!%p191_p2), 851712  }
   0xb   : > { %v4180_v19 = vld [vmem:[%s5505_s1 + $0x30] sm:$0xff] (!%p191_p2)   ;;  %v4182_v21 = vld [vmem:[%s5505_s1 + $0x38] sm:$0xff] (!%p191_p2)   ;;  %s3973_s14 = sshll.u32 (!%p191_p2), %s3965_s21, 1  ;;  %vm3799_vm12 = vcmask (!%p191_p2), 917312   ;;  %vm3806_vm13 = vcmask (!%p191_p2), 982912   ;;  %vm3813_vm14 = vcmask (!%p191_p2), 1048512  }
   0xc   : > { %4030 = vmatpush3.bf16.msra.mxu0 (!%p191_p2), %v4170_v3  ;;  %4148 = vmatpush3.bf16.msra.mxu1 (!%p191_p2), %v4170_v3  ;;  %p226_p4 = scmp.lt.s32.totalorder (!%p191_p2), %s3973_s14, 3 }
   0xd   : > { %4031 = vmatprep.subr.bf16.mxu0 (!%p191_p2), %v4171_v4  ;;  %4141 = vmatprep.subr.bf16.mxu1 (!%p191_p2), %v4171_v4 }
   0xe   : > { %s5511_s4 = smov (!%p219_p3, %s3970_s4), 63  ;;  %s5513_s14 = smov (!%p226_p4, %s3973_s14), 3 }
   0xf   : > { %s4026_s11 = sshll.u32 %s5511_s4, 4  ;;  %s228_s16 = scalar_lea.vmem %s5509_s5, %s5513_s14 }
  0x10   : > { %4032 = vmatpush3.bf16.msra.mxu0 %v4172_v5  ;;  %4149 = vmatpush3.bf16.msra.mxu1 %v4172_v5  ;;  %s4394_s18 = scalar_lea.vmem %s5504_s0, %s4026_s11 }
  0x11   : > { %4033 = vmatprep.subr.bf16.mxu0 %v4173_v6  ;;  %4142 = vmatprep.subr.bf16.mxu1 %v4173_v6  ;;  %v232_v11 = vld [vmem:[%s4394_s18 + $0x8] sm:$0xff]  ;;  %v234_v12 = vld [vmem:[%s4394_s18 + $0x18] sm:$0xff]  ;;  %v231_v22 = vld [vmem:[%s4394_s18] sm:$0xff] }
  0x12   : > { %v264_v13 = vld [vmem:[%s4394_s18 + $0x108] sm:$0xff]  ;;  %v296_v14 = vpack.c.bf16 %v234_v12, %v232_v11  ;;  %v266_v15 = vld [vmem:[%s4394_s18 + $0x118] sm:$0xff]  ;;  %v233_v23 = vld [vmem:[%s4394_s18 + $0x10] sm:$0xff] }
  0x13   : > { %v312_v16 = vpack.c.bf16 %v266_v15, %v264_v13  ;;  %v263_v24 = vld [vmem:[%s4394_s18 + $0x100] sm:$0xff]  ;;  %v265_v25 = vld [vmem:[%s4394_s18 + $0x110] sm:$0xff]  ;;  %v236_v26 = vld [vmem:[%s4394_s18 + $0x28] sm:$0xff]  ;;  %v295_v30 = vpack.c.bf16 %v233_v23, %v231_v22 }
  0x14   : > { %4034 = vmatpush3.bf16.msra.mxu0 %v4174_v7  ;;  %4150 = vmatpush3.bf16.msra.mxu1 %v4174_v7  ;;  %v238_v27 = vld [vmem:[%s4394_s18 + $0x38] sm:$0xff]  ;;  %v268_v28 = vld [vmem:[%s4394_s18 + $0x128] sm:$0xff]  ;;  %v311_v31 = vpack.c.bf16 %v265_v25, %v263_v24  ;;  %v235_v34 = vld [vmem:[%s4394_s18 + $0x20] sm:$0xff] }
  0x15   : > { %4035 = vmatprep.subr.bf16.mxu0 %v4175_v8  ;;  %4143 = vmatprep.subr.bf16.mxu1 %v4175_v8  ;;  %v270_v29 = vld [vmem:[%s4394_s18 + $0x138] sm:$0xff]  ;;  %v298_v32 = vpack.c.bf16 %v238_v27, %v236_v26  ;;  %v237_v35 = vld [vmem:[%s4394_s18 + $0x30] sm:$0xff]  ;;  %v267_v36 = vld [vmem:[%s4394_s18 + $0x120] sm:$0xff] }
  0x16   : > { %494 = vmatprep.mubr.bf16.mxu0 %v296_v14  ;;  %558 = vmatprep.mubr.bf16.mxu1 %v312_v16  ;;  %v314_v33 = vpack.c.bf16 %v270_v29, %v268_v28  ;;  %v269_v37 = vld [vmem:[%s4394_s18 + $0x130] sm:$0xff]  ;;  %v240_v38 = vld [vmem:[%s4394_s18 + $0x48] sm:$0xff]  ;;  %v242_v39 = vld [vmem:[%s4394_s18 + $0x58] sm:$0xff]  ;;  %v297_v42 = vpack.c.bf16 %v237_v35, %v235_v34 }
  0x17   : > { %v272_v40 = vld [vmem:[%s4394_s18 + $0x148] sm:$0xff]  ;;  %v274_v41 = vld [vmem:[%s4394_s18 + $0x158] sm:$0xff]  ;;  %v313_v43 = vpack.c.bf16 %v269_v37, %v267_v36  ;;  %v300_v44 = vpack.c.bf16 %v242_v39, %v240_v38  ;;  %v239_v46 = vld [vmem:[%s4394_s18 + $0x40] sm:$0xff] }
  0x18   : > { %4036 = vmatpush3.bf16.msra.mxu0 %v4176_v9  ;;  %4151 = vmatpush3.bf16.msra.mxu1 %v4176_v9  ;;  %v316_v45 = vpack.c.bf16 %v274_v41, %v272_v40  ;;  %v241_v47 = vld [vmem:[%s4394_s18 + $0x50] sm:$0xff]  ;;  %v271_v48 = vld [vmem:[%s4394_s18 + $0x140] sm:$0xff]  ;;  %v244_v50 = vld [vmem:[%s4394_s18 + $0x68] sm:$0xff] }
  0x19   : > { %4037 = vmatprep.subr.bf16.mxu0 %v4177_v10  ;;  %4144 = vmatprep.subr.bf16.mxu1 %v4177_v10  ;;  %v273_v49 = vld [vmem:[%s4394_s18 + $0x150] sm:$0xff]  ;;  %v246_v51 = vld [vmem:[%s4394_s18 + $0x78] sm:$0xff]  ;;  %v276_v52 = vld [vmem:[%s4394_s18 + $0x168] sm:$0xff]  ;;  %v299_v54 = vpack.c.bf16 %v241_v47, %v239_v46 }
  0x1a   : > { %v278_v53 = vld [vmem:[%s4394_s18 + $0x178] sm:$0xff]  ;;  %v315_v55 = vpack.c.bf16 %v273_v49, %v271_v48  ;;  %v302_v56 = vpack.c.bf16 %v246_v51, %v244_v50  ;;  %v243_v58 = vld [vmem:[%s4394_s18 + $0x60] sm:$0xff]  ;;  %v245_v59 = vld [vmem:[%s4394_s18 + $0x70] sm:$0xff] }
  0x1b   : > { %v318_v57 = vpack.c.bf16 %v278_v53, %v276_v52  ;;  %v275_v60 = vld [vmem:[%s4394_s18 + $0x160] sm:$0xff]  ;;  %v277_v61 = vld [vmem:[%s4394_s18 + $0x170] sm:$0xff]  ;;  %v248_v62 = vld [vmem:[%s4394_s18 + $0x88] sm:$0xff]  ;;  %v301_v2 = vpack.c.bf16 %v245_v59, %v243_v58 }
  0x1c   : > { %4038 = vmatpush3.bf16.msra.mxu0 %v4178_v17  ;;  %4152 = vmatpush3.bf16.msra.mxu1 %v4178_v17  ;;  %v250_v63 = vld [vmem:[%s4394_s18 + $0x98] sm:$0xff]  ;;  %v280_v0 = vld [vmem:[%s4394_s18 + $0x188] sm:$0xff]  ;;  %v317_v3 = vpack.c.bf16 %v277_v61, %v275_v60  ;;  %v247_v6 = vld [vmem:[%s4394_s18 + $0x80] sm:$0xff] }
  0x1d   : > { %4039 = vmatprep.subr.bf16.mxu0 %v4179_v18  ;;  %4145 = vmatprep.subr.bf16.mxu1 %v4179_v18  ;;  %v282_v1 = vld [vmem:[%s4394_s18 + $0x198] sm:$0xff]  ;;  %v304_v4 = vpack.c.bf16 %v250_v63, %v248_v62  ;;  %v249_v7 = vld [vmem:[%s4394_s18 + $0x90] sm:$0xff]  ;;  %v279_v8 = vld [vmem:[%s4394_s18 + $0x180] sm:$0xff] }
  0x1e   : > { %v320_v5 = vpack.c.bf16 %v282_v1, %v280_v0  ;;  %v281_v9 = vld [vmem:[%s4394_s18 + $0x190] sm:$0xff]  ;;  %v284_v10 = vld [vmem:[%s4394_s18 + $0x1a8] sm:$0xff]  ;;  %v286_v11 = vld [vmem:[%s4394_s18 + $0x1b8] sm:$0xff]  ;;  %v303_v14 = vpack.c.bf16 %v249_v7, %v247_v6 }
  0x1f   : > { %v252_v12 = vld [vmem:[%s4394_s18 + $0xa8] sm:$0xff]  ;;  %v254_v13 = vld [vmem:[%s4394_s18 + $0xb8] sm:$0xff]  ;;  %v319_v15 = vpack.c.bf16 %v281_v9, %v279_v8  ;;  %v322_v16 = vpack.c.bf16 %v286_v11, %v284_v10  ;;  %v283_v18 = vld [vmem:[%s4394_s18 + $0x1a0] sm:$0xff] }
  0x20   : > { %4040 = vmatpush3.bf16.msra.mxu0 %v4180_v19  ;;  %4153 = vmatpush3.bf16.msra.mxu1 %v4180_v19  ;;  %v306_v17 = vpack.c.bf16 %v254_v13, %v252_v12  ;;  %v285_v19 = vld [vmem:[%s4394_s18 + $0x1b0] sm:$0xff]  ;;  %v288_v22 = vld [vmem:[%s4394_s18 + $0x1c8] sm:$0xff]  ;;  %v290_v23 = vld [vmem:[%s4394_s18 + $0x1d8] sm:$0xff] }
  0x21   : > { %4041 = vmatprep.subr.bf16.mxu0 %v4181_v20  ;;  %4146 = vmatprep.subr.bf16.mxu1 %v4181_v20  ;;  %v251_v20 = vld [vmem:[%s4394_s18 + $0xa0] sm:$0xff]  ;;  %v256_v24 = vld [vmem:[%s4394_s18 + $0xc8] sm:$0xff]  ;;  %v258_v25 = vld [vmem:[%s4394_s18 + $0xd8] sm:$0xff]  ;;  %v321_v26 = vpack.c.bf16 %v285_v19, %v283_v18  ;;  %v324_v28 = vpack.c.bf16 %v290_v23, %v288_v22 }
  0x22   : > { %v308_v29 = vpack.c.bf16 %v258_v25, %v256_v24  ;;  %v292_v34 = vld [vmem:[%s4394_s18 + $0x1e8] sm:$0xff]  ;;  %v294_v35 = vld [vmem:[%s4394_s18 + $0x1f8] sm:$0xff]  ;;  %v4484_v52 = vld [vmem:[%s5506_s2] ss:$0 sm:$0xff] }
  0x23   : > { %v260_v36 = vld [vmem:[%s4394_s18 + $0xe8] sm:$0xff]  ;;  %v262_v37 = vld [vmem:[%s4394_s18 + $0xf8] sm:$0xff]  ;;  %v326_v40 = vpack.c.bf16 %v294_v35, %v292_v34  ;;  %v4491_v63 = vld [vmem:[%s5507_s3] ss:$0 sm:$0xff] }
  0x24   : > { %4042 = vmatpush3.bf16.msra.mxu0 %v4182_v21  ;;  %4154 = vmatpush3.bf16.msra.mxu1 %v4182_v21  ;;  %v253_v21 = vld [vmem:[%s4394_s18 + $0xb0] sm:$0xff]  ;;  %v310_v41 = vpack.c.bf16 %v262_v37, %v260_v36 }
  0x25   : > { %v305_v27 = vpack.c.bf16 %v253_v21, %v251_v20 }
  0x27   : > { %495 = vmatmul.mubr.bf16.vlgmr.msra.gmra.mrb[0].mxu0 %v295_v30  ;;  %559 = vmatmul.mubr.bf16.vlgmr.msra.gmra.mrb[0].mxu1 %v311_v31  ;;  %v287_v30 = vld [vmem:[%s4394_s18 + $0x1c0] sm:$0xff]  ;;  %v289_v31 = vld [vmem:[%s4394_s18 + $0x1d0] sm:$0xff] }
  0x28   : > { %502 = vmatprep.mubr.bf16.mxu0 %v298_v32  ;;  %566 = vmatprep.mubr.bf16.mxu1 %v314_v33  ;;  %v255_v32 = vld [vmem:[%s4394_s18 + $0xc0] sm:$0xff]  ;;  %v257_v33 = vld [vmem:[%s4394_s18 + $0xd0] sm:$0xff]  ;;  %v323_v38 = vpack.c.bf16 %v289_v31, %v287_v30 }
  0x29   : > { %v307_v39 = vpack.c.bf16 %v257_v33, %v255_v32 }
  0x2f   : > { %503 = vmatmul.mubr.bf16.gmra.mrb[4].mxu0 %v297_v42  ;;  %567 = vmatmul.mubr.bf16.gmra.mrb[4].mxu1 %v313_v43  ;;  %v291_v42 = vld [vmem:[%s4394_s18 + $0x1e0] sm:$0xff]  ;;  %v293_v43 = vld [vmem:[%s4394_s18 + $0x1f0] sm:$0xff] }
  0x30   : > { %510 = vmatprep.mubr.bf16.mxu0 %v300_v44  ;;  %574 = vmatprep.mubr.bf16.mxu1 %v316_v45  ;;  %v259_v44 = vld [vmem:[%s4394_s18 + $0xe0] sm:$0xff]  ;;  %v261_v45 = vld [vmem:[%s4394_s18 + $0xf0] sm:$0xff]  ;;  %v325_v46 = vpack.c.bf16 %v293_v43, %v291_v42 }
  0x31   : > { %v309_v47 = vpack.c.bf16 %v261_v45, %v259_v44 }
  0x37   : > { %511 = vmatmul.mubr.bf16.gmra.mrb[8].mxu0 %v299_v54  ;;  %575 = vmatmul.mubr.bf16.gmra.mrb[8].mxu1 %v315_v55 }
  0x38   : > { %518 = vmatprep.mubr.bf16.mxu0 %v302_v56  ;;  %582 = vmatprep.mubr.bf16.mxu1 %v318_v57 }
  0x3f   : > { %519 = vmatmul.mubr.bf16.gmra.mrb[12].mxu0 %v301_v2  ;;  %583 = vmatmul.mubr.bf16.gmra.mrb[12].mxu1 %v317_v3 }
  0x40   : > { %526 = vmatprep.mubr.bf16.mxu0 %v304_v4  ;;  %590 = vmatprep.mubr.bf16.mxu1 %v320_v5 }
  0x47   : > { %527 = vmatmul.mubr.bf16.gmra.mrb[16].mxu0 %v303_v14  ;;  %591 = vmatmul.mubr.bf16.gmra.mrb[16].mxu1 %v319_v15 }
  0x48   : > { %598 = vmatprep.mubr.bf16.mxu1 %v322_v16  ;;  %534 = vmatprep.mubr.bf16.mxu0 %v306_v17 }
  0x4f   : > { %599 = vmatmul.mubr.bf16.gmra.mrb[20].mxu1 %v321_v26  ;;  %535 = vmatmul.mubr.bf16.gmra.mrb[20].mxu0 %v305_v27 }
  0x50   : > { %606 = vmatprep.mubr.bf16.mxu1 %v324_v28  ;;  %542 = vmatprep.mubr.bf16.mxu0 %v308_v29 }
  0x57   : > { %607 = vmatmul.mubr.bf16.gmra.mrb[24].mxu1 %v323_v38  ;;  %543 = vmatmul.mubr.bf16.gmra.mrb[24].mxu0 %v307_v39 }
  0x58   : > { %614 = vmatprep.mubr.bf16.mxu1 %v326_v40  ;;  %550 = vmatprep.mubr.bf16.mxu0 %v310_v41 }
  0x5f   : > { %615 = vmatmul.mubr.bf16.gmra.mrb[28].mxu1 %v325_v46  ;;  %551 = vmatmul.mubr.bf16.gmra.mrb[28].mxu0 %v309_v47 }
  0xfa   : > { %v4043_v48 = vpop.f32.mrb[0].mxu0  ;;  %v4091_v49 = vpop.f32.mrb[0].mxu1 }
  0xfb   : > { %v4044_v50 = vpop.f32.mrb[1].mxu0  ;;  %v4092_v51 = vpop.f32.mrb[1].mxu1 }
  0xfc   : > { %v4045_v53 = vadd.f32 %v4044_v50, %v4043_v48  ;;  %v4093_v54 = vadd.f32 %v4092_v51, %v4091_v49  ;;  %v4046_v55 = vpop.f32.mrb[2].mxu0  ;;  %v4094_v56 = vpop.f32.mrb[2].mxu1 }
  0xfd   : > { %v4047_v57 = vpop.f32.mrb[3].mxu0  ;;  %v4095_v58 = vpop.f32.mrb[3].mxu1 }
  0xfe   : > { %v4048_v59 = vadd.f32 %v4047_v57, %v4046_v55  ;;  %v4096_v60 = vadd.f32 %v4095_v58, %v4094_v56  ;;  %v561_v61 = vadd.f32 %v4093_v54, %v4484_v52  ;;  %v497_v62 = vadd.f32 %v4045_v53, %v4484_v52 }
 0x100   : > { %v500_v0 = vadd.f32 %v4048_v59, %v4484_v52  ;;  %v639_v1 = vmax.f32 %v561_v61, 0.0  ;;  %v623_v2 = vmax.f32 %v497_v62, 0.0  ;;  %v564_v3 = vadd.f32 %v4096_v60, %v4484_v52 }
 0x102   : > { %v624_v4 = vmax.f32 %v500_v0, 0.0  ;;  %v4049_v5 = vpop.f32.mrb[4].mxu0  ;;  %v4097_v6 = vpop.f32.mrb[4].mxu1  ;;  %v678_v7 = vmul.f32 %v4491_v63, %v639_v1  ;;  %v662_v8 = vmul.f32 %v4491_v63, %v623_v2  ;;  %v640_v15 = vmax.f32 %v564_v3, 0.0 }
 0x103   : > { %v4050_v9 = vpop.f32.mrb[5].mxu0  ;;  %v4098_v10 = vpop.f32.mrb[5].mxu1 }
 0x104   : > { %v4051_v11 = vadd.f32 %v4050_v9, %v4049_v5  ;;  %v4099_v12 = vadd.f32 %v4098_v10, %v4097_v6  ;;  %726 = vadd.xlane.f32.xlu1 %v678_v7  ;;  %v4052_v13 = vpop.f32.mrb[6].mxu0  ;;  %694 = vadd.xlane.f32.xlu0 %v662_v8  ;;  %v4100_v14 = vpop.f32.mrb[6].mxu1  ;;  %v663_v18 = vmul.f32 %v4491_v63, %v624_v4 }
 0x105   : > { %v4053_v16 = vpop.f32.mrb[7].mxu0  ;;  %v4101_v17 = vpop.f32.mrb[7].mxu1  ;;  %v679_v30 = vmul.f32 %v4491_v63, %v640_v15 }
 0x106   : > { %v505_v19 = vadd.f32 %v4051_v11, %v4484_v52  ;;  %v569_v20 = vadd.f32 %v4099_v12, %v4484_v52  ;;  %v4054_v21 = vadd.f32 %v4053_v16, %v4052_v13  ;;  %v4102_v22 = vadd.f32 %v4101_v17, %v4100_v14 }
 0x108   : > { %v625_v23 = vmax.f32 %v505_v19, 0.0  ;;  %v641_v24 = vmax.f32 %v569_v20, 0.0  ;;  %v572_v25 = vadd.f32 %v4102_v22, %v4484_v52  ;;  %696 = vadd.xlane.f32.xlu0 %v663_v18  ;;  %v508_v26 = vadd.f32 %v4054_v21, %v4484_v52 }
 0x10a   : > { %v642_v27 = vmax.f32 %v572_v25, 0.0  ;;  %v4055_v28 = vpop.f32.mrb[8].mxu0  ;;  %v664_v29 = vmul.f32 %v4491_v63, %v625_v23  ;;  %v4103_v31 = vpop.f32.mrb[8].mxu1  ;;  %v680_v34 = vmul.f32 %v4491_v63, %v641_v24  ;;  %v626_v40 = vmax.f32 %v508_v26, 0.0 }
 0x10b   : > { %v4056_v32 = vpop.f32.mrb[9].mxu0  ;;  %v4104_v33 = vpop.f32.mrb[9].mxu1 }
 0x10c   : > { %v4057_v35 = vadd.f32 %v4056_v32, %v4055_v28  ;;  %698 = vadd.xlane.f32.xlu1 %v664_v29  ;;  %728 = vadd.xlane.f32.xlu0 %v679_v30  ;;  %v4058_v36 = vpop.f32.mrb[10].mxu0  ;;  %v4105_v37 = vadd.f32 %v4104_v33, %v4103_v31  ;;  %v681_v38 = vmul.f32 %v4491_v63, %v642_v27  ;;  %v4106_v39 = vpop.f32.mrb[10].mxu1 }
 0x10d   : > { %v4059_v41 = vpop.f32.mrb[11].mxu0  ;;  %v4107_v42 = vpop.f32.mrb[11].mxu1  ;;  %v665_v54 = vmul.f32 %v4491_v63, %v626_v40 }
 0x10e   : > { %v513_v43 = vadd.f32 %v4057_v35, %v4484_v52  ;;  %v4060_v44 = vadd.f32 %v4059_v41, %v4058_v36  ;;  %v577_v45 = vadd.f32 %v4105_v37, %v4484_v52  ;;  %v4108_v46 = vadd.f32 %v4107_v42, %v4106_v39 }
 0x110   : > { %v627_v47 = vmax.f32 %v513_v43, 0.0  ;;  %v516_v48 = vadd.f32 %v4060_v44, %v4484_v52  ;;  %v643_v49 = vmax.f32 %v577_v45, 0.0  ;;  %730 = vadd.xlane.f32.xlu1 %v680_v34  ;;  %732 = vadd.xlane.f32.xlu0 %v681_v38  ;;  %v580_v50 = vadd.f32 %v4108_v46, %v4484_v52 }
 0x112   : > { %v628_v51 = vmax.f32 %v516_v48, 0.0  ;;  %v4061_v53 = vpop.f32.mrb[12].mxu0  ;;  %v666_v55 = vmul.f32 %v4491_v63, %v627_v47  ;;  %v4109_v56 = vpop.f32.mrb[12].mxu1  ;;  %v644_v57 = vmax.f32 %v580_v50, 0.0  ;;  %v682_v60 = vmul.f32 %v4491_v63, %v643_v49 }
 0x113   : > { %v4062_v58 = vpop.f32.mrb[13].mxu0  ;;  %v4110_v59 = vpop.f32.mrb[13].mxu1 }
 0x114   : > { %v4063_v61 = vadd.f32 %v4062_v58, %v4061_v53  ;;  %700 = vadd.xlane.f32.xlu1 %v665_v54  ;;  %702 = vadd.xlane.f32.xlu0 %v666_v55  ;;  %v4064_v62 = vpop.f32.mrb[14].mxu0  ;;  %v4111_v0 = vadd.f32 %v4110_v59, %v4109_v56  ;;  %v667_v1 = vmul.f32 %v4491_v63, %v628_v51  ;;  %v4112_v2 = vpop.f32.mrb[14].mxu1 }
 0x115   : > { %v4065_v3 = vpop.f32.mrb[15].mxu0  ;;  %v4113_v4 = vpop.f32.mrb[15].mxu1  ;;  %v683_v9 = vmul.f32 %v4491_v63, %v644_v57 }
 0x116   : > { %v521_v5 = vadd.f32 %v4063_v61, %v4484_v52  ;;  %v4066_v6 = vadd.f32 %v4065_v3, %v4064_v62  ;;  %v585_v7 = vadd.f32 %v4111_v0, %v4484_v52  ;;  %v4114_v8 = vadd.f32 %v4113_v4, %v4112_v2 }
 0x118   : > { %v629_v10 = vmax.f32 %v521_v5, 0.0  ;;  %v524_v11 = vadd.f32 %v4066_v6, %v4484_v52  ;;  %v645_v12 = vmax.f32 %v585_v7, 0.0  ;;  %734 = vadd.xlane.f32.xlu1 %v682_v60  ;;  %704 = vadd.xlane.f32.xlu0 %v667_v1  ;;  %v588_v13 = vadd.f32 %v4114_v8, %v4484_v52 }
 0x11a   : > { %v630_v14 = vmax.f32 %v524_v11, 0.0  ;;  %v4067_v15 = vpop.f32.mrb[16].mxu0  ;;  %v668_v16 = vmul.f32 %v4491_v63, %v629_v10  ;;  %v4115_v17 = vpop.f32.mrb[16].mxu1  ;;  %v646_v19 = vmax.f32 %v588_v13, 0.0  ;;  %v684_v21 = vmul.f32 %v4491_v63, %v645_v12 }
 0x11b   : > { %v4068_v18 = vpop.f32.mrb[17].mxu0  ;;  %v4116_v20 = vpop.f32.mrb[17].mxu1 }
 0x11c   : > { %v4069_v22 = vadd.f32 %v4068_v18, %v4067_v15  ;;  %736 = vadd.xlane.f32.xlu1 %v683_v9  ;;  %706 = vadd.xlane.f32.xlu0 %v668_v16  ;;  %v4070_v23 = vpop.f32.mrb[18].mxu0  ;;  %v4117_v24 = vadd.f32 %v4116_v20, %v4115_v17  ;;  %v669_v25 = vmul.f32 %v4491_v63, %v630_v14  ;;  %v4118_v26 = vpop.f32.mrb[18].mxu1 }
 0x11d   : > { %v4071_v27 = vpop.f32.mrb[19].mxu0  ;;  %v4119_v28 = vpop.f32.mrb[19].mxu1  ;;  %v685_v33 = vmul.f32 %v4491_v63, %v646_v19 }
 0x11e   : > { %v529_v29 = vadd.f32 %v4069_v22, %v4484_v52  ;;  %v4072_v30 = vadd.f32 %v4071_v27, %v4070_v23  ;;  %v593_v31 = vadd.f32 %v4117_v24, %v4484_v52  ;;  %v4120_v32 = vadd.f32 %v4119_v28, %v4118_v26 }
 0x120   : > { %v631_v34 = vmax.f32 %v529_v29, 0.0  ;;  %v532_v35 = vadd.f32 %v4072_v30, %v4484_v52  ;;  %v647_v36 = vmax.f32 %v593_v31, 0.0  ;;  %738 = vadd.xlane.f32.xlu1 %v684_v21  ;;  %708 = vadd.xlane.f32.xlu0 %v669_v25  ;;  %v596_v37 = vadd.f32 %v4120_v32, %v4484_v52 }
 0x122   : > { %v632_v38 = vmax.f32 %v532_v35, 0.0  ;;  %v670_v39 = vmul.f32 %v4491_v63, %v631_v34  ;;  %v4121_v40 = vpop.f32.mrb[20].mxu1  ;;  %v4073_v41 = vpop.f32.mrb[20].mxu0  ;;  %v648_v42 = vmax.f32 %v596_v37, 0.0  ;;  %v686_v44 = vmul.f32 %v4491_v63, %v647_v36 }
 0x123   : > { %v4122_v43 = vpop.f32.mrb[21].mxu1  ;;  %v4074_v45 = vpop.f32.mrb[21].mxu0 }
 0x124   : > { %740 = vadd.xlane.f32.xlu1 %v685_v33  ;;  %710 = vadd.xlane.f32.xlu0 %v670_v39  ;;  %v4123_v46 = vadd.f32 %v4122_v43, %v4121_v40  ;;  %v671_v47 = vmul.f32 %v4491_v63, %v632_v38  ;;  %v4075_v48 = vadd.f32 %v4074_v45, %v4073_v41  ;;  %v4124_v49 = vpop.f32.mrb[22].mxu1  ;;  %v4076_v50 = vpop.f32.mrb[22].mxu0 }
 0x125   : > { %v4125_v51 = vpop.f32.mrb[23].mxu1  ;;  %v4077_v53 = vpop.f32.mrb[23].mxu0  ;;  %v687_v58 = vmul.f32 %v4491_v63, %v648_v42 }
 0x126   : > { %v601_v54 = vadd.f32 %v4123_v46, %v4484_v52  ;;  %v537_v55 = vadd.f32 %v4075_v48, %v4484_v52  ;;  %v4126_v56 = vadd.f32 %v4125_v51, %v4124_v49  ;;  %v4078_v57 = vadd.f32 %v4077_v53, %v4076_v50 }
 0x128   : > { %v649_v59 = vmax.f32 %v601_v54, 0.0  ;;  %742 = vadd.xlane.f32.xlu1 %v686_v44  ;;  %712 = vadd.xlane.f32.xlu0 %v671_v47  ;;  %v633_v60 = vmax.f32 %v537_v55, 0.0  ;;  %v604_v61 = vadd.f32 %v4126_v56, %v4484_v52  ;;  %v540_v62 = vadd.f32 %v4078_v57, %v4484_v52 }
 0x129   : > { %v4319_v55 = vmov 0  }
 0x12a   : > { %v634_v0 = vmax.f32 %v540_v62, 0.0  ;;  %v4127_v1 = vpop.f32.mrb[24].mxu1  ;;  %v4079_v2 = vpop.f32.mrb[24].mxu0  ;;  %v672_v3 = vmul.f32 %v4491_v63, %v633_v60  ;;  %v650_v4 = vmax.f32 %v604_v61, 0.0  ;;  %v688_v8 = vmul.f32 %v4491_v63, %v649_v59  ;;  %4166 = vset.pattern.permute.xlu1 %v4319_v55  ;;  %4165 = vset.pattern.permute.xlu0 %v4319_v55 }
 0x12b   : > { %v4128_v5 = vpop.f32.mrb[25].mxu1  ;;  %v4080_v6 = vpop.f32.mrb[25].mxu0 }
 0x12c   : > { %744 = vadd.xlane.f32.xlu1 %v687_v58  ;;  %v4129_v7 = vadd.f32 %v4128_v5, %v4127_v1  ;;  %v4081_v9 = vadd.f32 %v4080_v6, %v4079_v2  ;;  %v4130_v10 = vpop.f32.mrb[26].mxu1  ;;  %714 = vadd.xlane.f32.xlu0 %v672_v3  ;;  %v4082_v11 = vpop.f32.mrb[26].mxu0  ;;  %v673_v14 = vmul.f32 %v4491_v63, %v634_v0 }
 0x12d   : > { %v4131_v12 = vpop.f32.mrb[27].mxu1  ;;  %v4083_v13 = vpop.f32.mrb[27].mxu0  ;;  %v689_v19 = vmul.f32 %v4491_v63, %v650_v4 }
 0x12e   : > { %v609_v15 = vadd.f32 %v4129_v7, %v4484_v52  ;;  %v545_v16 = vadd.f32 %v4081_v9, %v4484_v52  ;;  %v4132_v17 = vadd.f32 %v4131_v12, %v4130_v10  ;;  %v4084_v18 = vadd.f32 %v4083_v13, %v4082_v11 }
 0x12f   : > { %v1016_v11 = vlaneseq }
 0x130   : > { %v651_v20 = vmax.f32 %v609_v15, 0.0  ;;  %746 = vadd.xlane.f32.xlu1 %v688_v8  ;;  %v635_v21 = vmax.f32 %v545_v16, 0.0  ;;  %v612_v22 = vadd.f32 %v4132_v17, %v4484_v52  ;;  %v548_v23 = vadd.f32 %v4084_v18, %v4484_v52  ;;  %716 = vadd.xlane.f32.xlu0 %v673_v14 }
 0x131   : > { %vm3912_vm15 = vcmp.lt.s32.totalorder %v1016_v11, 256 }
 0x132   : > { %v636_v24 = vmax.f32 %v548_v23, 0.0  ;;  %v4133_v25 = vpop.f32.mrb[28].mxu1  ;;  %v4085_v26 = vpop.f32.mrb[28].mxu0  ;;  %v674_v27 = vmul.f32 %v4491_v63, %v635_v21  ;;  %v652_v28 = vmax.f32 %v612_v22, 0.0  ;;  %v690_v32 = vmul.f32 %v4491_v63, %v651_v20 }
 0x133   : > { %v4134_v29 = vpop.f32.mrb[29].mxu1  ;;  %v4086_v30 = vpop.f32.mrb[29].mxu0  ;;  %v4567_v22 = vshrl.u32 %v1016_v11, 7 }
 0x134   : > { %748 = vadd.xlane.f32.xlu1 %v689_v19  ;;  %v4135_v31 = vadd.f32 %v4134_v29, %v4133_v25  ;;  %v4087_v33 = vadd.f32 %v4086_v30, %v4085_v26  ;;  %v4136_v34 = vpop.f32.mrb[30].mxu1  ;;  %718 = vadd.xlane.f32.xlu0 %v674_v27  ;;  %v4088_v35 = vpop.f32.mrb[30].mxu0  ;;  %v675_v38 = vmul.f32 %v4491_v63, %v636_v24  ;;  %v4320_v29 = vmov 1966171168  }
 0x135   : > { %v4137_v36 = vpop.f32.mrb[31].mxu1  ;;  %v4089_v37 = vpop.f32.mrb[31].mxu0  ;;  %v691_v43 = vmul.f32 %v4491_v63, %v652_v28  ;;  %v2045_v30 = vunpack.c.l.s4 %v4320_v29 }
 0x136   : > { %v617_v39 = vadd.f32 %v4135_v31, %v4484_v52  ;;  %v553_v40 = vadd.f32 %v4087_v33, %v4484_v52  ;;  %v4138_v41 = vadd.f32 %v4137_v36, %v4136_v34  ;;  %v4090_v42 = vadd.f32 %v4089_v37, %v4088_v35 }
 0x137   : > { %v4572_v33 = vsub.s32 0, %v4567_v22  ;;  %v4575_v36 = vsub.s32 1, %v4567_v22  ;;  %v4578_v37 = vsub.s32 2, %v4567_v22 }
 0x138   : > { %v653_v44 = vmax.f32 %v617_v39, 0.0  ;;  %750 = vadd.xlane.f32.xlu1 %v690_v32  ;;  %v637_v45 = vmax.f32 %v553_v40, 0.0  ;;  %v620_v46 = vadd.f32 %v4138_v41, %v4484_v52  ;;  %v556_v47 = vadd.f32 %v4090_v42, %v4484_v52  ;;  %720 = vadd.xlane.f32.xlu0 %v675_v38 }
 0x139   : > { %v4555_v52 = vstv %s758_s13 }
 0x13a   : > { %v654_v48 = vmax.f32 %v620_v46, 0.0  ;;  %v638_v49 = vmax.f32 %v556_v47, 0.0  ;;  %v676_v50 = vmul.f32 %v4491_v63, %v637_v45  ;;  %v692_v51 = vmul.f32 %v4491_v63, %v653_v44 }
 0x13b   : > { %v4583_v47 = vsub.s32 3, %v4567_v22 }
 0x13c   : > { %752 = vadd.xlane.f32.xlu1 %v691_v43  ;;  %722 = vadd.xlane.f32.xlu0 %v676_v50  ;;  %v693_v53 = vmul.f32 %v4491_v63, %v654_v48  ;;  %v677_v54 = vmul.f32 %v4491_v63, %v638_v49  ;;  %v2046_v43 = vunpack.c.0.s8 %v2045_v30  ;;  %v4586_v48 = vsub.s32 4, %v4567_v22 }
 0x13d   : > { %v4589_v49 = vsub.s32 5, %v4567_v22 }
 0x140   : > { %754 = vadd.xlane.f32.xlu1 %v692_v51  ;;  %724 = vadd.xlane.f32.xlu0 %v677_v54  ;;  %v4592_v54 = vsub.s32 6, %v4567_v22 }
 0x144   : > { %756 = vadd.xlane.f32.xlu1 %v693_v53 }
 0x191   : > { %v727_v56 = vpop.xlane.xlu1 %726  ;;  %v695_v57 = vpop.xlane.xlu0 %694 }
 0x192   : > { %v776_v58 = vadd.f32 %v4555_v52, %v727_v56  ;;  %v760_v59 = vadd.f32 %v4555_v52, %v695_v57 }
 0x194   : > { %v4008_v60 = vmul.f32 -1.442695, %v776_v58  ;;  %v3992_v61 = vmul.f32 -1.442695, %v760_v59  ;;  %v4595_v59 = vsub.s32 7, %v4567_v22 }
 0x195   : > { %v697_v62 = vpop.xlane.xlu0 %696 }
 0x196   : > { %4183 = vpow2.f32 %v4008_v60  ;;  %v761_v63 = vadd.f32 %v4555_v52, %v697_v62  ;;  %v4598_v60 = vsub.s32 %v2046_v43, %v4567_v22 }
 0x197   : > { %4185 = vpow2.f32 %v3992_v61 }
 0x198   : > { %v3993_v0 = vmul.f32 -1.442695, %v761_v63 }
 0x199   : > { %v699_v1 = vpop.xlane.xlu1 %698  ;;  %v729_v2 = vpop.xlane.xlu0 %728 }
 0x19a   : > { %4187 = vpow2.f32 %v3993_v0  ;;  %v762_v3 = vadd.f32 %v4555_v52, %v699_v1  ;;  %v777_v4 = vadd.f32 %v4555_v52, %v729_v2 }
 0x19c   : > { %v3994_v5 = vmul.f32 -1.442695, %v762_v3  ;;  %v4009_v6 = vmul.f32 -1.442695, %v777_v4 }
 0x19d   : > { %v731_v7 = vpop.xlane.xlu1 %730  ;;  %v733_v8 = vpop.xlane.xlu0 %732 }
 0x19e   : > { %4189 = vpow2.f32 %v3994_v5  ;;  %v778_v9 = vadd.f32 %v4555_v52, %v731_v7  ;;  %v779_v10 = vadd.f32 %v4555_v52, %v733_v8 }
 0x19f   : > { %4191 = vpow2.f32 %v4009_v6 }
 0x1a0   : > { %v4184_v12 = vpop.eup %4183  ;;  %v4010_v13 = vmul.f32 -1.442695, %v778_v9  ;;  %v4011_v16 = vmul.f32 -1.442695, %v779_v10 }
 0x1a1   : > { %v4186_v14 = vpop.eup %4185  ;;  %v904_v15 = vadd.f32 1.0, %v4184_v12  ;;  %v701_v17 = vpop.xlane.xlu1 %700 }
 0x1a2   : > { %v703_v18 = vpop.xlane.xlu0 %702  ;;  %4193 = vpow2.f32 %v4010_v13  ;;  %v763_v19 = vadd.f32 %v4555_v52, %v701_v17  ;;  %v888_v21 = vadd.f32 1.0, %v4186_v14 }
 0x1a3   : > { %v764_v20 = vadd.f32 %v4555_v52, %v703_v18  ;;  %4195 = vrcp.f32 %v904_v15 }
 0x1a4   : > { %v4188_v23 = vpop.eup %4187  ;;  %v3995_v24 = vmul.f32 -1.442695, %v763_v19  ;;  %4197 = vpow2.f32 %v4011_v16 }
 0x1a5   : > { %v3996_v25 = vmul.f32 -1.442695, %v764_v20  ;;  %v889_v26 = vadd.f32 1.0, %v4188_v23  ;;  %v735_v27 = vpop.xlane.xlu1 %734 }
 0x1a6   : > { %v705_v28 = vpop.xlane.xlu0 %704  ;;  %4199 = vpow2.f32 %v3995_v24  ;;  %v780_v31 = vadd.f32 %v4555_v52, %v735_v27 }
 0x1a7   : > { %v765_v32 = vadd.f32 %v4555_v52, %v705_v28  ;;  %4201 = vrcp.f32 %v888_v21 }
 0x1a8   : > { %v4190_v34 = vpop.eup %4189  ;;  %4203 = vpow2.f32 %v3996_v25  ;;  %v4012_v35 = vmul.f32 -1.442695, %v780_v31 }
 0x1a9   : > { %v4192_v38 = vpop.eup %4191  ;;  %4205 = vrcp.f32 %v889_v26  ;;  %v890_v39 = vadd.f32 1.0, %v4190_v34  ;;  %v3997_v40 = vmul.f32 -1.442695, %v765_v32  ;;  %v737_v41 = vpop.xlane.xlu1 %736 }
 0x1aa   : > { %v707_v42 = vpop.xlane.xlu0 %706  ;;  %v905_v44 = vadd.f32 1.0, %v4192_v38  ;;  %4207 = vpow2.f32 %v4012_v35  ;;  %v781_v45 = vadd.f32 %v4555_v52, %v737_v41 }
 0x1ab   : > { %v766_v46 = vadd.f32 %v4555_v52, %v707_v42  ;;  %4209 = vrcp.f32 %v890_v39 }
 0x1ac   : > { %v4194_v50 = vpop.eup %4193  ;;  %4211 = vrcp.f32 %v905_v44  ;;  %v4013_v51 = vmul.f32 -1.442695, %v781_v45 }
 0x1ad   : > { %v3998_v53 = vmul.f32 -1.442695, %v766_v46  ;;  %v4196_v55 = vpop.eup %4195  ;;  %v906_v56 = vadd.f32 1.0, %v4194_v50  ;;  %4213 = vpow2.f32 %v3997_v40  ;;  %v739_v57 = vpop.xlane.xlu1 %738 }
 0x1ae   : > { %v709_v58 = vpop.xlane.xlu0 %708  ;;  %4215 = vpow2.f32 %v4013_v51  ;;  %v782_v61 = vadd.f32 %v4555_v52, %v739_v57  ;;  %v1531_v63 = vrot.slane %v4196_v55, %v4572_v33  ;;  %v4198_v0 = vpop.eup %4197  ;;  %v1535_v1 = vrot.slane %v4196_v55, %v4575_v36 }
 0x1af   : > { %v767_v62 = vadd.f32 %v4555_v52, %v709_v58  ;;  %4217 = vrcp.f32 %v906_v56  ;;  %v1539_v2 = vrot.slane %v4196_v55, %v4578_v37  ;;  %v1543_v3 = vrot.slane %v4196_v55, %v4583_v47 }
 0x1b0   : > { %v4200_v4 = vpop.eup %4199  ;;  %v907_v5 = vadd.f32 1.0, %v4198_v0  ;;  %4219 = vpow2.f32 %v3998_v53  ;;  %v4014_v6 = vmul.f32 -1.442695, %v782_v61  ;;  %v1547_v13 = vrot.slane %v4196_v55, %v4586_v48 }
 0x1b1   : > { %v3999_v7 = vmul.f32 -1.442695, %v767_v62  ;;  %v4606_v8 = vpop.eup %4201  ;;  %v891_v9 = vadd.f32 1.0, %v4200_v4  ;;  %v741_v10 = vpop.xlane.xlu1 %740  ;;  %v1551_v14 = vrot.slane %v4196_v55, %v4589_v49  ;;  %v1555_v15 = vrot.slane %v4196_v55, %v4592_v54 }
 0x1b2   : > { %v711_v12 = vpop.xlane.xlu0 %710  ;;  %v4204_v16 = vpop.eup %4203  ;;  %4221 = vrcp.f32 %v907_v5  ;;  %v783_v17 = vadd.f32 %v4555_v52, %v741_v10  ;;  %v1559_v19 = vrot.slane %v4196_v55, %v4595_v59  ;;  %v2824_v23 = vcombine.low %v1531_v63, %v1535_v1 }
 0x1b3   : > { %v768_v18 = vadd.f32 %v4555_v52, %v711_v12  ;;  %v4614_v20 = vpop.eup %4205  ;;  %4223 = vrcp.f32 %v891_v9  ;;  %v892_v21 = vadd.f32 1.0, %v4204_v16  ;;  %v2825_v24 = vcombine.low %v1539_v2, %v1543_v3 }
 0x1b4   : > { %v4208_v25 = vpop.eup %4207  ;;  %4225 = vpow2.f32 %v4014_v6  ;;  %v4015_v26 = vmul.f32 -1.442695, %v783_v17  ;;  %v2826_v28 = vcombine.low %v1547_v13, %v1551_v14  ;;  %v2827_v34 = vcombine.low %v1555_v15, %v1559_v19 }
 0x1b5   : > { %v4000_v27 = vmul.f32 -1.442695, %v768_v18  ;;  %v4616_v29 = vpop.eup %4209  ;;  %4227 = vrcp.f32 %v892_v21  ;;  %v908_v30 = vadd.f32 1.0, %v4208_v25  ;;  %v743_v31 = vpop.xlane.xlu1 %742  ;;  %v2834_v35 = vrot.slane %v2824_v23, %v4598_v60 }
 0x1b6   : > { %v713_v32 = vpop.xlane.xlu0 %712  ;;  %v4619_v38 = vpop.eup %4211  ;;  %4229 = vpow2.f32 %v3999_v7  ;;  %v784_v39 = vadd.f32 %v4555_v52, %v743_v31  ;;  %v2841_v41 = vrot.slane %v2825_v24, %v4598_v60  ;;  %v2848_v43 = vrot.slane %v2826_v28, %v4598_v60 }
 0x1b7   : > { %v769_v40 = vadd.f32 %v4555_v52, %v713_v32  ;;  %v4214_v42 = vpop.eup %4213  ;;  %4231 = vrcp.f32 %v908_v30  ;;  %v2855_v44 = vrot.slane %v2827_v34, %v4598_v60  ;;  %v1019_v45 = vrot.slane %v4606_v8, %v4572_v33 }
 0x1b8   : > { %v4216_v46 = vpop.eup %4215  ;;  %v893_v50 = vadd.f32 1.0, %v4214_v42  ;;  %4233 = vpow2.f32 %v4015_v26  ;;  %v4016_v51 = vmul.f32 -1.442695, %v784_v39  ;;  %v2856_v58 = vcombine.low %v2834_v35, %v2841_v41 }
 0x1b9   : > { %v4001_v53 = vmul.f32 -1.442695, %v769_v40  ;;  %v4628_v55 = vpop.eup %4217  ;;  %v909_v56 = vadd.f32 1.0, %v4216_v46  ;;  %4235 = vpow2.f32 %v4000_v27  ;;  %v745_v57 = vpop.xlane.xlu1 %744  ;;  %v2857_v61 = vcombine.low %v2848_v43, %v2855_v44 }
 0x1ba   : > { %v4220_v62 = vpop.eup %4219  ;;  %4237 = vrcp.f32 %v893_v50  ;;  %v785_v63 = vadd.f32 %v4555_v52, %v745_v57  ;;  %v1023_v0 = vrot.slane %v4606_v8, %v4575_v36  ;;  %v1027_v1 = vrot.slane %v4606_v8, %v4578_v37 }
 0x1bb   : > { %4239 = vrcp.f32 %v909_v56  ;;  %v894_v2 = vadd.f32 1.0, %v4220_v62  ;;  %v2864_v3 = vrot.slane %v2856_v58, %v4598_v60  ;;  %v2871_v4 = vrot.slane %v2857_v61, %v4598_v60 }
 0x1bc   : > { %v4637_v5 = vpop.eup %4221  ;;  %4241 = vpow2.f32 %v4016_v51  ;;  %v4017_v6 = vmul.f32 -1.442695, %v785_v63  ;;  %v1031_v7 = vrot.slane %v4606_v8, %v4583_v47  ;;  %v1035_v9 = vrot.slane %v4606_v8, %v4586_v48 }
 0x1bd   : > { %v4643_v10 = vpop.eup %4223  ;;  %4243 = vrcp.f32 %v894_v2  ;;  %v2872_v12 = vcombine.low %v2864_v3, %v2871_v4  ;;  %v1039_v13 = vrot.slane %v4606_v8, %v4589_v49  ;;  %v1043_v14 = vrot.slane %v4606_v8, %v4592_v54  ;;  %v747_v15 = vpop.xlane.xlu1 %746 }
 0x1be   : > { %v4226_v16 = vpop.eup %4225  ;;  %4245 = vpow2.f32 %v4001_v53  ;;  %v1047_v17 = vrot.slane %v4606_v8, %v4595_v59  ;;  %v2040_v18 = vcombine.low %v1019_v45, %v1023_v0  ;;  %v2041_v19 = vcombine.low %v1027_v1, %v1031_v7 }
 0x1bf   : > { %v4651_v21 = vpop.eup %4227  ;;  %v910_v23 = vadd.f32 1.0, %v4226_v16  ;;  %4247 = vpow2.f32 %v4017_v6  ;;  %3657 = vperm.xlu1 %4166, %v2872_v12   ;;  %v2042_v24 = vcombine.low %v1035_v9, %v1039_v13  ;;  %v786_v25 = vadd.f32 %v4555_v52, %v747_v15  ;;  %v715_v6 = vpop.xlane.xlu0 %714 }
 0x1c0   : > { %v4230_v26 = vpop.eup %4229  ;;  %v2043_v27 = vcombine.low %v1043_v14, %v1047_v17  ;;  %v2050_v28 = vrot.slane %v2040_v18, %v4598_v60  ;;  %v2057_v30 = vrot.slane %v2041_v19, %v4598_v60  ;;  %v1051_v31 = vrot.slane %v4614_v20, %v4572_v33 }
 0x1c1   : > { %v4658_v8 = vpop.eup %4231  ;;  %4249 = vrcp.f32 %v910_v23  ;;  %v895_v32 = vadd.f32 1.0, %v4230_v26  ;;  %v2064_v34 = vrot.slane %v2042_v24, %v4598_v60  ;;  %v4018_v35 = vmul.f32 -1.442695, %v786_v25  ;;  %v749_v0 = vpop.xlane.xlu1 %748 }
 0x1c2   : > { %v4234_v39 = vpop.eup %4233  ;;  %v2071_v40 = vrot.slane %v2043_v27, %v4598_v60  ;;  %v2072_v41 = vcombine.low %v2050_v28, %v2057_v30  ;;  %v1055_v42 = vrot.slane %v4614_v20, %v4575_v36  ;;  %v1059_v43 = vrot.slane %v4614_v20, %v4578_v37 }
 0x1c3   : > { %v4236_v44 = vpop.eup %4235  ;;  %4251 = vrcp.f32 %v895_v32  ;;  %v911_v45 = vadd.f32 1.0, %v4234_v39  ;;  %v1063_v46 = vrot.slane %v4614_v20, %v4583_v47  ;;  %v1067_v50 = vrot.slane %v4614_v20, %v4586_v48 }
 0x1c4   : > { %v4670_v51 = vpop.eup %4237  ;;  %v896_v53 = vadd.f32 1.0, %v4236_v44  ;;  %v2073_v56 = vcombine.low %v2064_v34, %v2071_v40  ;;  %v2080_v57 = vrot.slane %v2072_v41, %v4598_v60  ;;  %4253 = vpow2.f32 %v4018_v35 }
 0x1c5   : > { %v4673_v58 = vpop.eup %4239  ;;  %4255 = vrcp.f32 %v911_v45  ;;  %v1071_v61 = vrot.slane %v4614_v20, %v4589_v49  ;;  %v1075_v62 = vrot.slane %v4614_v20, %v4592_v54  ;;  %v1079_v63 = vrot.slane %v4614_v20, %v4595_v59 }
 0x1c6   : > { %v4242_v1 = vpop.eup %4241  ;;  %4257 = vrcp.f32 %v896_v53  ;;  %v2087_v2 = vrot.slane %v2073_v56, %v4598_v60  ;;  %v2089_v3 = vcombine.low %v1051_v31, %v1055_v42  ;;  %v2090_v4 = vcombine.low %v1059_v43, %v1063_v46 }
 0x1c7   : > { %v4682_v7 = vpop.eup %4243  ;;  %v912_v9 = vadd.f32 1.0, %v4242_v1  ;;  %v2091_v12 = vcombine.low %v1067_v50, %v1071_v61  ;;  %v2092_v13 = vcombine.low %v1075_v62, %v1079_v63  ;;  %v770_v14 = vadd.f32 %v4555_v52, %v715_v6 }
 0x1c8   : > { %v4246_v15 = vpop.eup %4245  ;;  %v2088_v16 = vcombine.low %v2080_v57, %v2087_v2  ;;  %v2099_v17 = vrot.slane %v2089_v3, %v4598_v60  ;;  %v2106_v20 = vrot.slane %v2090_v4, %v4598_v60  ;;  %v787_v18 = vadd.f32 %v4555_v52, %v749_v0 }
 0x1c9   : > { %v4248_v19 = vpop.eup %4247  ;;  %4259 = vrcp.f32 %v912_v9  ;;  %v897_v23 = vadd.f32 1.0, %v4246_v15  ;;  %v2113_v24 = vrot.slane %v2091_v12, %v4598_v60  ;;  %v2120_v25 = vrot.slane %v2092_v13, %v4598_v60  ;;  %v717_v13 = vpop.xlane.xlu0 %716 }
 0x1ca   : > { %v913_v26 = vadd.f32 1.0, %v4248_v19  ;;  %3609 = vperm.xlu0 %4165, %v2088_v16   ;;  %v2121_v27 = vcombine.low %v2099_v17, %v2106_v20  ;;  %v4002_v28 = vmul.f32 -1.442695, %v770_v14  ;;  %v4019_v30 = vmul.f32 -1.442695, %v787_v18  ;;  %v751_v20 = vpop.xlane.xlu1 %750 }
 0x1cb   : > { %v4690_v31 = vpop.eup %4249  ;;  %4261 = vrcp.f32 %v897_v23  ;;  %v2122_v32 = vcombine.low %v2113_v24, %v2120_v25  ;;  %v1083_v34 = vrot.slane %v4616_v29, %v4572_v33  ;;  %v1087_v35 = vrot.slane %v4616_v29, %v4575_v36 }
 0x1cc   : > { %4263 = vrcp.f32 %v913_v26  ;;  %v2129_v39 = vrot.slane %v2121_v27, %v4598_v60  ;;  %v1091_v40 = vrot.slane %v4616_v29, %v4578_v37  ;;  %v1095_v41 = vrot.slane %v4616_v29, %v4583_v47 }
 0x1cd   : > { %v4701_v42 = vpop.eup %4251  ;;  %v2136_v43 = vrot.slane %v2122_v32, %v4598_v60  ;;  %4265 = vpow2.f32 %v4002_v28  ;;  %v1099_v44 = vrot.slane %v4616_v29, %v4586_v48  ;;  %v1103_v45 = vrot.slane %v4616_v29, %v4589_v49 }
 0x1ce   : > { %v4254_v46 = vpop.eup %4253  ;;  %4267 = vpow2.f32 %v4019_v30  ;;  %v1107_v50 = vrot.slane %v4616_v29, %v4592_v54  ;;  %v1111_v53 = vrot.slane %v4616_v29, %v4595_v59  ;;  %v2138_v56 = vcombine.low %v1083_v34, %v1087_v35 }
 0x1cf   : > { %v4712_v57 = vpop.eup %4255  ;;  %v914_v61 = vadd.f32 1.0, %v4254_v46  ;;  %v2137_v62 = vcombine.low %v2129_v39, %v2136_v43  ;;  %v2139_v63 = vcombine.low %v1091_v40, %v1095_v41  ;;  %v2140_v0 = vcombine.low %v1099_v44, %v1103_v45 }
 0x1d0   : > { %v4714_v1 = vpop.eup %4257  ;;  %v2141_v2 = vcombine.low %v1107_v50, %v1111_v53  ;;  %v2148_v3 = vrot.slane %v2138_v56, %v4598_v60  ;;  %v1563_v4 = vrot.slane %v4619_v38, %v4572_v33  ;;  %v1567_v6 = vrot.slane %v4619_v38, %v4575_v36 }
 0x1d1   : > { %4269 = vrcp.f32 %v914_v61  ;;  %3612 = vperm.xlu1 %4166, %v2137_v62   ;;  %v2155_v29 = vrot.slane %v2139_v63, %v4598_v60  ;;  %v2162_v9 = vrot.slane %v2140_v0, %v4598_v60  ;;  %v1571_v12 = vrot.slane %v4619_v38, %v4578_v37 }
 0x1d2   : > { %v2169_v14 = vrot.slane %v2141_v2, %v4598_v60  ;;  %v1575_v15 = vrot.slane %v4619_v38, %v4583_v47  ;;  %v1579_v16 = vrot.slane %v4619_v38, %v4586_v48  ;;  %v1583_v17 = vrot.slane %v4619_v38, %v4589_v49 }
 0x1d3   : > { %v4732_v18 = vpop.eup %4259  ;;  %v2170_v19 = vcombine.low %v2148_v3, %v2155_v29  ;;  %v1587_v23 = vrot.slane %v4619_v38, %v4592_v54  ;;  %v1591_v24 = vrot.slane %v4619_v38, %v4595_v59  ;;  %v2873_v25 = vcombine.low %v1563_v4, %v1567_v6 }
 0x1d4   : > { %v2171_v26 = vcombine.low %v2162_v9, %v2169_v14  ;;  %v2874_v27 = vcombine.low %v1571_v12, %v1575_v15  ;;  %v2875_v28 = vcombine.low %v1579_v16, %v1583_v17  ;;  %v771_v30 = vadd.f32 %v4555_v52, %v717_v13 }
 0x1d5   : > { %v4739_v32 = vpop.eup %4261  ;;  %v2178_v34 = vrot.slane %v2170_v19, %v4598_v60  ;;  %v2876_v35 = vcombine.low %v1587_v23, %v1591_v24  ;;  %v2883_v39 = vrot.slane %v2873_v25, %v4598_v60  ;;  %v788_v40 = vadd.f32 %v4555_v52, %v751_v20 }
 0x1d6   : > { %v4744_v41 = vpop.eup %4263  ;;  %v2185_v43 = vrot.slane %v2171_v26, %v4598_v60  ;;  %v2890_v38 = vrot.slane %v2874_v27, %v4598_v60  ;;  %v2897_v44 = vrot.slane %v2875_v28, %v4598_v60  ;;  %v4003_v45 = vmul.f32 -1.442695, %v771_v30 }
 0x1d7   : > { %v4266_v46 = vpop.eup %4265  ;;  %v2904_v50 = vrot.slane %v2876_v35, %v4598_v60  ;;  %v4020_v53 = vmul.f32 -1.442695, %v788_v40  ;;  %v1595_v56 = vrot.slane %v4628_v55, %v4572_v33  ;;  %v1599_v61 = vrot.slane %v4628_v55, %v4575_v36  ;;  %v753_v35 = vpop.xlane.xlu1 %752 }
 0x1d8   : > { %v4268_v62 = vpop.eup %4267  ;;  %v898_v63 = vadd.f32 1.0, %v4266_v46  ;;  %v2186_v0 = vcombine.low %v2178_v34, %v2185_v43  ;;  %v2905_v2 = vcombine.low %v2883_v39, %v2890_v38  ;;  %4271 = vpow2.f32 %v4003_v45 }
 0x1d9   : > { %v915_v3 = vadd.f32 1.0, %v4268_v62  ;;  %v2906_v4 = vcombine.low %v2897_v44, %v2904_v50  ;;  %4273 = vpow2.f32 %v4020_v53  ;;  %v1603_v6 = vrot.slane %v4628_v55, %v4578_v37  ;;  %v719_v53 = vpop.xlane.xlu0 %718 }
 0x1da   : > { %4275 = vrcp.f32 %v898_v63  ;;  %3615 = vperm.xlu1 %4166, %v2186_v0   ;;  %v2913_v29 = vrot.slane %v2905_v2, %v4598_v60  ;;  %v1607_v9 = vrot.slane %v4628_v55, %v4583_v47  ;;  %v1611_v12 = vrot.slane %v4628_v55, %v4586_v48 }
 0x1db   : > { %v4761_v13 = vpop.eup %4269  ;;  %4277 = vrcp.f32 %v915_v3  ;;  %v2920_v14 = vrot.slane %v2906_v4, %v4598_v60  ;;  %v1615_v15 = vrot.slane %v4628_v55, %v4589_v49  ;;  %v1619_v16 = vrot.slane %v4628_v55, %v4592_v54 }
 0x1dc   : > { %v1623_v17 = vrot.slane %v4628_v55, %v4595_v59  ;;  %v2922_v20 = vcombine.low %v1595_v56, %v1599_v61  ;;  %v2923_v19 = vcombine.low %v1603_v6, %v1607_v9  ;;  %v1627_v23 = vrot.slane %v4637_v5, %v4572_v33 }
 0x1dd   : > { %v2921_v24 = vcombine.low %v2913_v29, %v2920_v14  ;;  %v2924_v25 = vcombine.low %v1611_v12, %v1615_v15  ;;  %v1631_v26 = vrot.slane %v4637_v5, %v4575_v36  ;;  %v1635_v27 = vrot.slane %v4637_v5, %v4578_v37 }
 0x1de   : > { %v2925_v28 = vcombine.low %v1619_v16, %v1623_v17  ;;  %v2932_v30 = vrot.slane %v2922_v20, %v4598_v60  ;;  %v2939_v34 = vrot.slane %v2923_v19, %v4598_v60  ;;  %v1639_v55 = vrot.slane %v4637_v5, %v4583_v47 }
 0x1df   : > { %3660 = vperm.xlu0 %4165, %v2921_v24   ;;  %v2946_v39 = vrot.slane %v2924_v25, %v4598_v60  ;;  %v1643_v40 = vrot.slane %v4637_v5, %v4586_v48  ;;  %v1647_v43 = vrot.slane %v4637_v5, %v4589_v49  ;;  %v1651_v38 = vrot.slane %v4637_v5, %v4592_v54 }
 0x1e0   : > { %v2953_v44 = vrot.slane %v2925_v28, %v4598_v60  ;;  %v2954_v45 = vcombine.low %v2932_v30, %v2939_v34  ;;  %v1655_v46 = vrot.slane %v4637_v5, %v4595_v59  ;;  %v2971_v50 = vcombine.low %v1627_v23, %v1631_v26  ;;  %v721_v34 = vpop.xlane.xlu0 %720 }
 0x1e1   : > { %v2972_v56 = vcombine.low %v1635_v27, %v1639_v55  ;;  %v2973_v61 = vcombine.low %v1643_v40, %v1647_v43  ;;  %v772_v62 = vadd.f32 %v4555_v52, %v719_v53  ;;  %v789_v63 = vadd.f32 %v4555_v52, %v753_v35  ;;  %v755_v40 = vpop.xlane.xlu1 %754 }
 0x1e2   : > { %v4272_v0 = vpop.eup %4271  ;;  %v2955_v2 = vcombine.low %v2946_v39, %v2953_v44  ;;  %v2962_v3 = vrot.slane %v2954_v45, %v4598_v60  ;;  %v2974_v4 = vcombine.low %v1651_v38, %v1655_v46  ;;  %v2981_v6 = vrot.slane %v2971_v50, %v4598_v60 }
 0x1e3   : > { %v4274_v29 = vpop.eup %4273  ;;  %v899_v9 = vadd.f32 1.0, %v4272_v0  ;;  %v2988_v12 = vrot.slane %v2972_v56, %v4598_v60  ;;  %v2995_v5 = vrot.slane %v2973_v61, %v4598_v60  ;;  %v4004_v14 = vmul.f32 -1.442695, %v772_v62 }
 0x1e4   : > { %v4796_v15 = vpop.eup %4275  ;;  %v916_v16 = vadd.f32 1.0, %v4274_v29  ;;  %v2969_v17 = vrot.slane %v2955_v2, %v4598_v60  ;;  %v3002_v20 = vrot.slane %v2974_v4, %v4598_v60  ;;  %v4021_v19 = vmul.f32 -1.442695, %v789_v63 }
 0x1e5   : > { %v4800_v23 = vpop.eup %4277  ;;  %4279 = vrcp.f32 %v899_v9  ;;  %v3003_v24 = vcombine.low %v2981_v6, %v2988_v12  ;;  %v1115_v25 = vrot.slane %v4643_v10, %v4572_v33  ;;  %v1119_v26 = vrot.slane %v4643_v10, %v4575_v36 }
 0x1e6   : > { %4281 = vrcp.f32 %v916_v16  ;;  %v2970_v27 = vcombine.low %v2962_v3, %v2969_v17  ;;  %v3004_v28 = vcombine.low %v2995_v5, %v3002_v20  ;;  %v1123_v30 = vrot.slane %v4643_v10, %v4578_v37  ;;  %v757_v16 = vpop.xlane.xlu1 %756 }
 0x1e7   : > { %v3011_v55 = vrot.slane %v3003_v24, %v4598_v60  ;;  %4283 = vpow2.f32 %v4004_v14  ;;  %v1127_v35 = vrot.slane %v4643_v10, %v4583_v47  ;;  %v1131_v39 = vrot.slane %v4643_v10, %v4586_v48 }
 0x1e8   : > { %3663 = vperm.xlu1 %4166, %v2970_v27   ;;  %v3018_v43 = vrot.slane %v3004_v28, %v4598_v60  ;;  %4285 = vpow2.f32 %v4021_v19  ;;  %v1135_v38 = vrot.slane %v4643_v10, %v4589_v49  ;;  %v1139_v44 = vrot.slane %v4643_v10, %v4592_v54 }
 0x1e9   : > { %v1143_v45 = vrot.slane %v4643_v10, %v4595_v59  ;;  %v2187_v46 = vcombine.low %v1115_v25, %v1119_v26  ;;  %v2188_v50 = vcombine.low %v1123_v30, %v1127_v35  ;;  %v773_v53 = vadd.f32 %v4555_v52, %v721_v34  ;;  %v723_v30 = vpop.xlane.xlu0 %722 }
 0x1ea   : > { %v3019_v56 = vcombine.low %v3011_v55, %v3018_v43  ;;  %v2189_v61 = vcombine.low %v1131_v39, %v1135_v38  ;;  %v790_v62 = vadd.f32 %v4555_v52, %v755_v40  ;;  %v1147_v63 = vrot.slane %v4651_v21, %v4572_v33 }
 0x1eb   : > { %v2190_v0 = vcombine.low %v1139_v44, %v1143_v45  ;;  %v2197_v2 = vrot.slane %v2187_v46, %v4598_v60  ;;  %v2204_v3 = vrot.slane %v2188_v50, %v4598_v60  ;;  %v4005_v4 = vmul.f32 -1.442695, %v773_v53 }
 0x1ec   : > { %3666 = vperm.xlu0 %4165, %v3019_v56   ;;  %v2211_v10 = vrot.slane %v2189_v61, %v4598_v60  ;;  %v4022_v6 = vmul.f32 -1.442695, %v790_v62  ;;  %v1151_v29 = vrot.slane %v4651_v21, %v4575_v36  ;;  %v1155_v9 = vrot.slane %v4651_v21, %v4578_v37 }
 0x1ed   : > { %v2218_v12 = vrot.slane %v2190_v0, %v4598_v60  ;;  %v2219_v5 = vcombine.low %v2197_v2, %v2204_v3  ;;  %4287 = vpow2.f32 %v4005_v4  ;;  %v1159_v14 = vrot.slane %v4651_v21, %v4583_v47 }
 0x1ee   : > { %4289 = vpow2.f32 %v4022_v6  ;;  %v1163_v17 = vrot.slane %v4651_v21, %v4586_v48  ;;  %v1167_v20 = vrot.slane %v4651_v21, %v4589_v49  ;;  %v1171_v19 = vrot.slane %v4651_v21, %v4592_v54 }
 0x1ef   : > { %v4840_v24 = vpop.eup %4279  ;;  %v2220_v25 = vcombine.low %v2211_v10, %v2218_v12  ;;  %v2227_v26 = vrot.slane %v2219_v5, %v4598_v60  ;;  %v1175_v27 = vrot.slane %v4651_v21, %v4595_v59  ;;  %v2236_v28 = vcombine.low %v1147_v63, %v1151_v29 }
 0x1f0   : > { %v4845_v34 = vpop.eup %4281  ;;  %v2237_v55 = vcombine.low %v1155_v9, %v1159_v14  ;;  %v2238_v35 = vcombine.low %v1163_v17, %v1167_v20  ;;  %v774_v39 = vadd.f32 %v4555_v52, %v723_v30  ;;  %v791_v40 = vadd.f32 %v4555_v52, %v757_v16 }
 0x1f1   : > { %v4284_v43 = vpop.eup %4283  ;;  %v2234_v38 = vrot.slane %v2220_v25, %v4598_v60  ;;  %v2239_v44 = vcombine.low %v1171_v19, %v1175_v27  ;;  %v2246_v45 = vrot.slane %v2236_v28, %v4598_v60  ;;  %v1691_v46 = vrot.slane %v4673_v58, %v4572_v33 }
 0x1f2   : > { %v4286_v21 = vpop.eup %4285  ;;  %v900_v50 = vadd.f32 1.0, %v4284_v43  ;;  %v2253_v53 = vrot.slane %v2237_v55, %v4598_v60  ;;  %v2260_v56 = vrot.slane %v2238_v35, %v4598_v60  ;;  %v4006_v61 = vmul.f32 -1.442695, %v774_v39 }
 0x1f3   : > { %v917_v62 = vadd.f32 1.0, %v4286_v21  ;;  %v2235_v63 = vcombine.low %v2227_v26, %v2234_v38  ;;  %v2267_v0 = vrot.slane %v2239_v44, %v4598_v60  ;;  %v4023_v2 = vmul.f32 -1.442695, %v791_v40  ;;  %v725_v21 = vpop.xlane.xlu0 %724 }
 0x1f4   : > { %4291 = vrcp.f32 %v900_v50  ;;  %v2268_v3 = vcombine.low %v2246_v45, %v2253_v53  ;;  %v1695_v4 = vrot.slane %v4673_v58, %v4575_v36  ;;  %v1699_v10 = vrot.slane %v4673_v58, %v4578_v37 }
 0x1f5   : > { %4293 = vrcp.f32 %v917_v62  ;;  %3618 = vperm.xlu1 %4166, %v2235_v63   ;;  %v2269_v6 = vcombine.low %v2260_v56, %v2267_v0  ;;  %v1703_v29 = vrot.slane %v4673_v58, %v4583_v47  ;;  %v1707_v9 = vrot.slane %v4673_v58, %v4586_v48 }
 0x1f6   : > { %v2276_v12 = vrot.slane %v2268_v3, %v4598_v60  ;;  %4295 = vpow2.f32 %v4006_v61  ;;  %v1711_v5 = vrot.slane %v4673_v58, %v4589_v49  ;;  %v1715_v14 = vrot.slane %v4673_v58, %v4592_v54 }
 0x1f7   : > { %v4288_v16 = vpop.eup %4287  ;;  %v2283_v17 = vrot.slane %v2269_v6, %v4598_v60  ;;  %4297 = vpow2.f32 %v4023_v2  ;;  %v1719_v20 = vrot.slane %v4673_v58, %v4595_v59  ;;  %v3069_v19 = vcombine.low %v1691_v46, %v1695_v4 }
 0x1f8   : > { %v4290_v25 = vpop.eup %4289  ;;  %v901_v26 = vadd.f32 1.0, %v4288_v16  ;;  %v3070_v27 = vcombine.low %v1699_v10, %v1703_v29  ;;  %v3071_v28 = vcombine.low %v1707_v9, %v1711_v5  ;;  %v1659_v30 = vrot.slane %v4658_v8, %v4572_v33 }
 0x1f9   : > { %v918_v55 = vadd.f32 1.0, %v4290_v25  ;;  %v2284_v35 = vcombine.low %v2276_v12, %v2283_v17  ;;  %v3072_v39 = vcombine.low %v1715_v14, %v1719_v20  ;;  %v3079_v40 = vrot.slane %v3069_v19, %v4598_v60 }
 0x1fa   : > { %4299 = vrcp.f32 %v901_v26  ;;  %v3086_v43 = vrot.slane %v3070_v27, %v4598_v60  ;;  %v3093_v38 = vrot.slane %v3071_v28, %v4598_v60  ;;  %v1663_v58 = vrot.slane %v4658_v8, %v4575_v36 }
 0x1fb   : > { %4301 = vrcp.f32 %v918_v55  ;;  %3621 = vperm.xlu1 %4166, %v2284_v35   ;;  %v3100_v44 = vrot.slane %v3072_v39, %v4598_v60  ;;  %v1667_v45 = vrot.slane %v4658_v8, %v4578_v37  ;;  %v1671_v46 = vrot.slane %v4658_v8, %v4583_v47 }
 0x1fc   : > { %v3101_v50 = vcombine.low %v3079_v40, %v3086_v43  ;;  %v1675_v53 = vrot.slane %v4658_v8, %v4586_v48  ;;  %v1679_v56 = vrot.slane %v4658_v8, %v4589_v49  ;;  %v1683_v61 = vrot.slane %v4658_v8, %v4592_v54 }
 0x1fd   : > { %v3102_v62 = vcombine.low %v3093_v38, %v3100_v44  ;;  %v1687_v63 = vrot.slane %v4658_v8, %v4595_v59  ;;  %v3020_v0 = vcombine.low %v1659_v30, %v1663_v58  ;;  %v3021_v2 = vcombine.low %v1667_v45, %v1671_v46 }
 0x1fe   : > { %v4892_v3 = vpop.eup %4291  ;;  %v3109_v4 = vrot.slane %v3101_v50, %v4598_v60  ;;  %v3022_v10 = vcombine.low %v1675_v53, %v1679_v56  ;;  %v775_v6 = vadd.f32 %v4555_v52, %v725_v21  ;;  %v1179_v29 = vrot.slane %v4670_v51, %v4572_v33 }
 0x1ff   : > { %v4898_v9 = vpop.eup %4293  ;;  %v3116_v12 = vrot.slane %v3102_v62, %v4598_v60  ;;  %v3023_v5 = vcombine.low %v1683_v61, %v1687_v63  ;;  %v3030_v14 = vrot.slane %v3020_v0, %v4598_v60  ;;  %v3037_v8 = vrot.slane %v3021_v2, %v4598_v60 }
 0x200   : > { %v4296_v16 = vpop.eup %4295  ;;  %v3044_v17 = vrot.slane %v3022_v10, %v4598_v60  ;;  %v4007_v20 = vmul.f32 -1.442695, %v775_v6  ;;  %v1183_v19 = vrot.slane %v4670_v51, %v4575_v36  ;;  %v1187_v52 = vrot.slane %v4670_v51, %v4578_v37 }
 0x201   : > { %v4298_v25 = vpop.eup %4297  ;;  %v902_v26 = vadd.f32 1.0, %v4296_v16  ;;  %v3117_v27 = vcombine.low %v3109_v4, %v3116_v12  ;;  %v3051_v28 = vrot.slane %v3023_v5, %v4598_v60  ;;  %v3052_v30 = vcombine.low %v3030_v14, %v3037_v8 }
 0x202   : > { %v919_v55 = vadd.f32 1.0, %v4298_v25  ;;  %4303 = vpow2.f32 %v4007_v20  ;;  %v1191_v35 = vrot.slane %v4670_v51, %v4583_v47  ;;  %v1195_v39 = vrot.slane %v4670_v51, %v4586_v48 }
 0x203   : > { %4305 = vrcp.f32 %v902_v26  ;;  %3672 = vperm.xlu0 %4165, %v3117_v27   ;;  %v3053_v40 = vcombine.low %v3044_v17, %v3051_v28  ;;  %v3060_v43 = vrot.slane %v3052_v30, %v4598_v60  ;;  %v1199_v38 = vrot.slane %v4670_v51, %v4589_v49 }
 0x204   : > { %v4916_v58 = vpop.eup %4299  ;;  %4307 = vrcp.f32 %v919_v55  ;;  %v1203_v44 = vrot.slane %v4670_v51, %v4592_v54  ;;  %v1207_v45 = vrot.slane %v4670_v51, %v4595_v59  ;;  %v2285_v46 = vcombine.low %v1179_v29, %v1183_v19 }
 0x205   : > { %v4922_v21 = vpop.eup %4301  ;;  %v3067_v50 = vrot.slane %v3053_v40, %v4598_v60  ;;  %v2286_v53 = vcombine.low %v1187_v52, %v1191_v35  ;;  %v2287_v56 = vcombine.low %v1195_v39, %v1199_v38  ;;  %v1755_v61 = vrot.slane %v4712_v57, %v4572_v33 }
 0x206   : > { %v2288_v62 = vcombine.low %v1203_v44, %v1207_v45  ;;  %v2295_v63 = vrot.slane %v2285_v46, %v4598_v60  ;;  %v1759_v0 = vrot.slane %v4712_v57, %v4575_v36  ;;  %v1763_v2 = vrot.slane %v4712_v57, %v4578_v37 }
 0x207   : > { %v3068_v51 = vcombine.low %v3060_v43, %v3067_v50  ;;  %v2302_v4 = vrot.slane %v2286_v53, %v4598_v60  ;;  %v2309_v10 = vrot.slane %v2287_v56, %v4598_v60  ;;  %v1767_v6 = vrot.slane %v4712_v57, %v4583_v47 }
 0x208   : > { %v2316_v29 = vrot.slane %v2288_v62, %v4598_v60  ;;  %v1771_v12 = vrot.slane %v4712_v57, %v4586_v48  ;;  %v1775_v5 = vrot.slane %v4712_v57, %v4589_v49  ;;  %v1779_v14 = vrot.slane %v4712_v57, %v4592_v54 }
 0x209   : > { %3669 = vperm.xlu1 %4166, %v3068_v51   ;;  %v2317_v8 = vcombine.low %v2295_v63, %v2302_v4  ;;  %v1783_v16 = vrot.slane %v4712_v57, %v4595_v59  ;;  %v3167_v17 = vcombine.low %v1755_v61, %v1759_v0  ;;  %v3168_v20 = vcombine.low %v1763_v2, %v1767_v6 }
 0x20a   : > { %v2318_v19 = vcombine.low %v2309_v10, %v2316_v29  ;;  %v3169_v52 = vcombine.low %v1771_v12, %v1775_v5  ;;  %v1211_v25 = vrot.slane %v4682_v7, %v4572_v33  ;;  %v1215_v26 = vrot.slane %v4682_v7, %v4575_v36 }
 0x20b   : > { %v2325_v27 = vrot.slane %v2317_v8, %v4598_v60  ;;  %v3170_v28 = vcombine.low %v1779_v14, %v1783_v16  ;;  %v3177_v30 = vrot.slane %v3167_v17, %v4598_v60  ;;  %v3184_v55 = vrot.slane %v3168_v20, %v4598_v60 }
 0x20c   : > { %v4304_v35 = vpop.eup %4303  ;;  %v2332_v57 = vrot.slane %v2318_v19, %v4598_v60  ;;  %v3191_v39 = vrot.slane %v3169_v52, %v4598_v60  ;;  %v1219_v40 = vrot.slane %v4682_v7, %v4578_v37  ;;  %v1223_v43 = vrot.slane %v4682_v7, %v4583_v47 }
 0x20d   : > { %v4958_v38 = vpop.eup %4305  ;;  %v903_v44 = vadd.f32 1.0, %v4304_v35  ;;  %v3198_v45 = vrot.slane %v3170_v28, %v4598_v60  ;;  %v3199_v46 = vcombine.low %v3177_v30, %v3184_v55  ;;  %v1227_v50 = vrot.slane %v4682_v7, %v4586_v48 }
 0x20e   : > { %v4963_v53 = vpop.eup %4307  ;;  %v2333_v56 = vcombine.low %v2325_v27, %v2332_v57  ;;  %v1231_v61 = vrot.slane %v4682_v7, %v4589_v49  ;;  %v1235_v62 = vrot.slane %v4682_v7, %v4592_v54  ;;  %v1239_v63 = vrot.slane %v4682_v7, %v4595_v59 }
 0x20f   : > { %4309 = vrcp.f32 %v903_v44  ;;  %v3200_v0 = vcombine.low %v3191_v39, %v3198_v45  ;;  %v3207_v2 = vrot.slane %v3199_v46, %v4598_v60  ;;  %v2334_v51 = vcombine.low %v1211_v25, %v1215_v26 }
 0x210   : > { %3624 = vperm.xlu1 %4166, %v2333_v56   ;;  %v2335_v4 = vcombine.low %v1219_v40, %v1223_v43  ;;  %v2336_v10 = vcombine.low %v1227_v50, %v1231_v61  ;;  %v2337_v6 = vcombine.low %v1235_v62, %v1239_v63  ;;  %v1723_v29 = vrot.slane %v4690_v31, %v4572_v33 }
 0x211   : > { %v3214_v12 = vrot.slane %v3200_v0, %v4598_v60  ;;  %v2344_v5 = vrot.slane %v2334_v51, %v4598_v60  ;;  %v1727_v14 = vrot.slane %v4690_v31, %v4575_v36  ;;  %v1731_v7 = vrot.slane %v4690_v31, %v4578_v37 }
 0x212   : > { %v2351_v8 = vrot.slane %v2335_v4, %v4598_v60  ;;  %v2358_v16 = vrot.slane %v2336_v10, %v4598_v60  ;;  %v2365_v17 = vrot.slane %v2337_v6, %v4598_v60  ;;  %v1735_v20 = vrot.slane %v4690_v31, %v4583_v47 }
 0x213   : > { %v3215_v19 = vcombine.low %v3207_v2, %v3214_v12  ;;  %v1739_v52 = vrot.slane %v4690_v31, %v4586_v48  ;;  %v1743_v25 = vrot.slane %v4690_v31, %v4589_v49  ;;  %v1747_v26 = vrot.slane %v4690_v31, %v4592_v54 }
 0x214   : > { %v2366_v27 = vcombine.low %v2344_v5, %v2351_v8  ;;  %v2367_v28 = vcombine.low %v2358_v16, %v2365_v17  ;;  %v1751_v30 = vrot.slane %v4690_v31, %v4595_v59  ;;  %v3118_v55 = vcombine.low %v1723_v29, %v1727_v14 }
 0x215   : > { %3678 = vperm.xlu0 %4165, %v3215_v19   ;;  %v3119_v35 = vcombine.low %v1731_v7, %v1735_v20  ;;  %v3120_v57 = vcombine.low %v1739_v52, %v1743_v25  ;;  %v1307_v39 = vrot.slane %v4739_v32, %v4572_v33  ;;  %v1311_v40 = vrot.slane %v4739_v32, %v4575_v36 }
 0x216   : > { %v2374_v43 = vrot.slane %v2366_v27, %v4598_v60  ;;  %v2381_v44 = vrot.slane %v2367_v28, %v4598_v60  ;;  %v3121_v45 = vcombine.low %v1747_v26, %v1751_v30  ;;  %v3128_v46 = vrot.slane %v3118_v55, %v4598_v60 }
 0x217   : > { %v3135_v50 = vrot.slane %v3119_v35, %v4598_v60  ;;  %v3142_v31 = vrot.slane %v3120_v57, %v4598_v60  ;;  %v1315_v56 = vrot.slane %v4739_v32, %v4578_v37  ;;  %v1319_v61 = vrot.slane %v4739_v32, %v4583_v47 }
 0x218   : > { %v2382_v62 = vcombine.low %v2374_v43, %v2381_v44  ;;  %v3149_v63 = vrot.slane %v3121_v45, %v4598_v60  ;;  %v1323_v0 = vrot.slane %v4739_v32, %v4586_v48  ;;  %v1327_v2 = vrot.slane %v4739_v32, %v4589_v49 }
 0x219   : > { %v5011_v51 = vpop.eup %4309  ;;  %v3150_v4 = vcombine.low %v3128_v46, %v3135_v50  ;;  %v1331_v10 = vrot.slane %v4739_v32, %v4592_v54  ;;  %v1335_v6 = vrot.slane %v4739_v32, %v4595_v59  ;;  %v2481_v29 = vcombine.low %v1307_v39, %v1311_v40 }
 0x21a   : > { %3627 = vperm.xlu1 %4166, %v2382_v62   ;;  %v3151_v12 = vcombine.low %v3142_v31, %v3149_v63  ;;  %v2482_v5 = vcombine.low %v1315_v56, %v1319_v61  ;;  %v2483_v14 = vcombine.low %v1323_v0, %v1327_v2  ;;  %v1243_v7 = vrot.slane %v4701_v42, %v4572_v33 }
 0x21b   : > { %v3158_v8 = vrot.slane %v3150_v4, %v4598_v60  ;;  %v2484_v16 = vcombine.low %v1331_v10, %v1335_v6  ;;  %v2491_v17 = vrot.slane %v2481_v29, %v4598_v60  ;;  %v1247_v20 = vrot.slane %v4701_v42, %v4575_v36 }
 0x21c   : > { %v3165_v19 = vrot.slane %v3151_v12, %v4598_v60  ;;  %v2498_v32 = vrot.slane %v2482_v5, %v4598_v60  ;;  %v2505_v52 = vrot.slane %v2483_v14, %v4598_v60  ;;  %v1251_v25 = vrot.slane %v4701_v42, %v4578_v37 }
 0x21d   : > { %v2512_v26 = vrot.slane %v2484_v16, %v4598_v60  ;;  %v1255_v27 = vrot.slane %v4701_v42, %v4583_v47  ;;  %v1259_v28 = vrot.slane %v4701_v42, %v4586_v48  ;;  %v1263_v30 = vrot.slane %v4701_v42, %v4589_v49 }
 0x21e   : > { %v3166_v55 = vcombine.low %v3158_v8, %v3165_v19  ;;  %v2513_v35 = vcombine.low %v2491_v17, %v2498_v32  ;;  %v1267_v57 = vrot.slane %v4701_v42, %v4592_v54  ;;  %v1271_v39 = vrot.slane %v4701_v42, %v4595_v59 }
 0x21f   : > { %v2514_v40 = vcombine.low %v2505_v52, %v2512_v26  ;;  %v2383_v43 = vcombine.low %v1243_v7, %v1247_v20  ;;  %v2384_v44 = vcombine.low %v1251_v25, %v1255_v27  ;;  %v2385_v45 = vcombine.low %v1259_v28, %v1263_v30 }
 0x220   : > { %3675 = vperm.xlu1 %4166, %v3166_v55   ;;  %v2521_v46 = vrot.slane %v2513_v35, %v4598_v60  ;;  %v2386_v50 = vcombine.low %v1267_v57, %v1271_v39  ;;  %v1819_v31 = vrot.slane %v4744_v41, %v4572_v33  ;;  %v1823_v56 = vrot.slane %v4744_v41, %v4575_v36 }
 0x221   : > { %v2528_v61 = vrot.slane %v2514_v40, %v4598_v60  ;;  %v2393_v62 = vrot.slane %v2383_v43, %v4598_v60  ;;  %v2400_v42 = vrot.slane %v2384_v44, %v4598_v60  ;;  %v2407_v63 = vrot.slane %v2385_v45, %v4598_v60 }
 0x222   : > { %v2414_v0 = vrot.slane %v2386_v50, %v4598_v60  ;;  %v1827_v2 = vrot.slane %v4744_v41, %v4578_v37  ;;  %v1831_v4 = vrot.slane %v4744_v41, %v4583_v47  ;;  %v1835_v10 = vrot.slane %v4744_v41, %v4586_v48 }
 0x223   : > { %v2529_v6 = vcombine.low %v2521_v46, %v2528_v61  ;;  %v2415_v29 = vcombine.low %v2393_v62, %v2400_v42  ;;  %v1839_v12 = vrot.slane %v4744_v41, %v4589_v49  ;;  %v1843_v5 = vrot.slane %v4744_v41, %v4592_v54 }
 0x224   : > { %v2416_v14 = vcombine.low %v2407_v63, %v2414_v0  ;;  %v1847_v7 = vrot.slane %v4744_v41, %v4595_v59  ;;  %v3265_v8 = vcombine.low %v1819_v31, %v1823_v56  ;;  %v3266_v16 = vcombine.low %v1827_v2, %v1831_v4 }
 0x225   : > { %3636 = vperm.xlu0 %4165, %v2529_v6   ;;  %v2423_v17 = vrot.slane %v2415_v29, %v4598_v60  ;;  %v3267_v20 = vcombine.low %v1835_v10, %v1839_v12  ;;  %v1275_v19 = vrot.slane %v4714_v1, %v4572_v33  ;;  %v1279_v32 = vrot.slane %v4714_v1, %v4575_v36 }
 0x226   : > { %v2430_v52 = vrot.slane %v2416_v14, %v4598_v60  ;;  %v3268_v25 = vcombine.low %v1843_v5, %v1847_v7  ;;  %v3275_v26 = vrot.slane %v3265_v8, %v4598_v60  ;;  %v3282_v27 = vrot.slane %v3266_v16, %v4598_v60 }
 0x227   : > { %v3289_v41 = vrot.slane %v3267_v20, %v4598_v60  ;;  %v1283_v28 = vrot.slane %v4714_v1, %v4578_v37  ;;  %v1287_v30 = vrot.slane %v4714_v1, %v4583_v47  ;;  %v1291_v55 = vrot.slane %v4714_v1, %v4586_v48 }
 0x228   : > { %v2431_v35 = vcombine.low %v2423_v17, %v2430_v52  ;;  %v3296_v57 = vrot.slane %v3268_v25, %v4598_v60  ;;  %v3297_v39 = vcombine.low %v3275_v26, %v3282_v27  ;;  %v1295_v40 = vrot.slane %v4714_v1, %v4589_v49 }
 0x229   : > { %v1299_v43 = vrot.slane %v4714_v1, %v4592_v54  ;;  %v1303_v44 = vrot.slane %v4714_v1, %v4595_v59  ;;  %v2432_v45 = vcombine.low %v1275_v19, %v1279_v32  ;;  %v2433_v46 = vcombine.low %v1283_v28, %v1287_v30 }
 0x22a   : > { %3630 = vperm.xlu1 %4166, %v2431_v35   ;;  %v3298_v50 = vcombine.low %v3289_v41, %v3296_v57  ;;  %v3305_v31 = vrot.slane %v3297_v39, %v4598_v60  ;;  %v2434_v56 = vcombine.low %v1291_v55, %v1295_v40  ;;  %v1851_v61 = vrot.slane %v4761_v13, %v4572_v33 }
 0x22b   : > { %v2435_v62 = vcombine.low %v1299_v43, %v1303_v44  ;;  %v2442_v42 = vrot.slane %v2432_v45, %v4598_v60  ;;  %v2449_v63 = vrot.slane %v2433_v46, %v4598_v60  ;;  %v1855_v0 = vrot.slane %v4761_v13, %v4575_v36 }
 0x22c   : > { %v3312_v1 = vrot.slane %v3298_v50, %v4598_v60  ;;  %v2456_v2 = vrot.slane %v2434_v56, %v4598_v60  ;;  %v1859_v4 = vrot.slane %v4761_v13, %v4578_v37  ;;  %v1863_v10 = vrot.slane %v4761_v13, %v4583_v47 }
 0x22d   : > { %v2463_v6 = vrot.slane %v2435_v62, %v4598_v60  ;;  %v2464_v29 = vcombine.low %v2442_v42, %v2449_v63  ;;  %v1867_v12 = vrot.slane %v4761_v13, %v4586_v48  ;;  %v1871_v5 = vrot.slane %v4761_v13, %v4589_v49 }
 0x22e   : > { %v3313_v14 = vcombine.low %v3305_v31, %v3312_v1  ;;  %v1875_v7 = vrot.slane %v4761_v13, %v4592_v54  ;;  %v1879_v8 = vrot.slane %v4761_v13, %v4595_v59  ;;  %v3314_v16 = vcombine.low %v1851_v61, %v1855_v0 }
 0x22f   : > { %v2465_v17 = vcombine.low %v2456_v2, %v2463_v6  ;;  %v2472_v20 = vrot.slane %v2464_v29, %v4598_v60  ;;  %v3315_v19 = vcombine.low %v1859_v4, %v1863_v10  ;;  %v3316_v32 = vcombine.low %v1867_v12, %v1871_v5 }
 0x230   : > { %3684 = vperm.xlu0 %4165, %v3313_v14   ;;  %v3317_v52 = vcombine.low %v1875_v7, %v1879_v8  ;;  %v3324_v25 = vrot.slane %v3314_v16, %v4598_v60  ;;  %v1787_v26 = vrot.slane %v4732_v18, %v4572_v33  ;;  %v1791_v27 = vrot.slane %v4732_v18, %v4575_v36 }
 0x231   : > { %v2479_v41 = vrot.slane %v2465_v17, %v4598_v60  ;;  %v3331_v13 = vrot.slane %v3315_v19, %v4598_v60  ;;  %v3338_v28 = vrot.slane %v3316_v32, %v4598_v60  ;;  %v1795_v30 = vrot.slane %v4732_v18, %v4578_v37 }
 0x232   : > { %v3345_v55 = vrot.slane %v3317_v52, %v4598_v60  ;;  %v1799_v35 = vrot.slane %v4732_v18, %v4583_v47  ;;  %v1803_v57 = vrot.slane %v4732_v18, %v4586_v48  ;;  %v1807_v39 = vrot.slane %v4732_v18, %v4589_v49 }
 0x233   : > { %v2480_v40 = vcombine.low %v2472_v20, %v2479_v41  ;;  %v3346_v43 = vcombine.low %v3324_v25, %v3331_v13  ;;  %v1811_v44 = vrot.slane %v4732_v18, %v4592_v54  ;;  %v1815_v45 = vrot.slane %v4732_v18, %v4595_v59 }
 0x234   : > { %v3347_v46 = vcombine.low %v3338_v28, %v3345_v55  ;;  %v3216_v50 = vcombine.low %v1787_v26, %v1791_v27  ;;  %v3217_v31 = vcombine.low %v1795_v30, %v1799_v35  ;;  %v3218_v56 = vcombine.low %v1803_v57, %v1807_v39 }
 0x235   : > { %3633 = vperm.xlu1 %4166, %v2480_v40   ;;  %v3354_v61 = vrot.slane %v3346_v43, %v4598_v60  ;;  %v3219_v62 = vcombine.low %v1811_v44, %v1815_v45  ;;  %v1883_v42 = vrot.slane %v4800_v23, %v4572_v33  ;;  %v1887_v63 = vrot.slane %v4800_v23, %v4575_v36 }
 0x236   : > { %v3361_v0 = vrot.slane %v3347_v46, %v4598_v60  ;;  %v3226_v1 = vrot.slane %v3216_v50, %v4598_v60  ;;  %v3233_v18 = vrot.slane %v3217_v31, %v4598_v60  ;;  %v3240_v2 = vrot.slane %v3218_v56, %v4598_v60 }
 0x237   : > { %v3247_v4 = vrot.slane %v3219_v62, %v4598_v60  ;;  %v1891_v10 = vrot.slane %v4800_v23, %v4578_v37  ;;  %v1895_v6 = vrot.slane %v4800_v23, %v4583_v47  ;;  %v1899_v29 = vrot.slane %v4800_v23, %v4586_v48 }
 0x238   : > { %v3362_v12 = vcombine.low %v3354_v61, %v3361_v0  ;;  %v3248_v5 = vcombine.low %v3226_v1, %v3233_v18  ;;  %v1903_v14 = vrot.slane %v4800_v23, %v4589_v49  ;;  %v1907_v7 = vrot.slane %v4800_v23, %v4592_v54 }
 0x239   : > { %v3249_v8 = vcombine.low %v3240_v2, %v3247_v4  ;;  %v1911_v16 = vrot.slane %v4800_v23, %v4595_v59  ;;  %v3363_v17 = vcombine.low %v1883_v42, %v1887_v63  ;;  %v3364_v20 = vcombine.low %v1891_v10, %v1895_v6 }
 0x23a   : > { %3687 = vperm.xlu0 %4165, %v3362_v12   ;;  %v3256_v19 = vrot.slane %v3248_v5, %v4598_v60  ;;  %v3365_v32 = vcombine.low %v1899_v29, %v1903_v14  ;;  %v1915_v52 = vrot.slane %v4845_v34, %v4572_v33  ;;  %v1919_v25 = vrot.slane %v4845_v34, %v4575_v36 }
 0x23b   : > { %v3263_v26 = vrot.slane %v3249_v8, %v4598_v60  ;;  %v3366_v27 = vcombine.low %v1907_v7, %v1911_v16  ;;  %v3373_v41 = vrot.slane %v3363_v17, %v4598_v60  ;;  %v3380_v13 = vrot.slane %v3364_v20, %v4598_v60 }
 0x23c   : > { %v3387_v23 = vrot.slane %v3365_v32, %v4598_v60  ;;  %v1923_v28 = vrot.slane %v4845_v34, %v4578_v37  ;;  %v1927_v30 = vrot.slane %v4845_v34, %v4583_v47  ;;  %v1931_v55 = vrot.slane %v4845_v34, %v4586_v48 }
 0x23d   : > { %v3264_v35 = vcombine.low %v3256_v19, %v3263_v26  ;;  %v3394_v57 = vrot.slane %v3366_v27, %v4598_v60  ;;  %v3395_v39 = vcombine.low %v3373_v41, %v3380_v13  ;;  %v1935_v40 = vrot.slane %v4845_v34, %v4589_v49 }
 0x23e   : > { %v1939_v43 = vrot.slane %v4845_v34, %v4592_v54  ;;  %v1943_v44 = vrot.slane %v4845_v34, %v4595_v59  ;;  %v3412_v45 = vcombine.low %v1915_v52, %v1919_v25  ;;  %v3413_v46 = vcombine.low %v1923_v28, %v1927_v30 }
 0x23f   : > { %3681 = vperm.xlu1 %4166, %v3264_v35   ;;  %v3396_v50 = vcombine.low %v3387_v23, %v3394_v57  ;;  %v3403_v31 = vrot.slane %v3395_v39, %v4598_v60  ;;  %v3414_v56 = vcombine.low %v1931_v55, %v1935_v40  ;;  %v1339_v61 = vrot.slane %v4796_v15, %v4572_v33 }
 0x240   : > { %v3415_v62 = vcombine.low %v1939_v43, %v1943_v44  ;;  %v3422_v42 = vrot.slane %v3412_v45, %v4598_v60  ;;  %v3429_v63 = vrot.slane %v3413_v46, %v4598_v60  ;;  %v1343_v0 = vrot.slane %v4796_v15, %v4575_v36 }
 0x241   : > { %v3410_v34 = vrot.slane %v3396_v50, %v4598_v60  ;;  %v3436_v1 = vrot.slane %v3414_v56, %v4598_v60  ;;  %v1347_v18 = vrot.slane %v4796_v15, %v4578_v37  ;;  %v1351_v2 = vrot.slane %v4796_v15, %v4583_v47 }
 0x242   : > { %v3443_v4 = vrot.slane %v3415_v62, %v4598_v60  ;;  %v3444_v10 = vcombine.low %v3422_v42, %v3429_v63  ;;  %v1355_v6 = vrot.slane %v4796_v15, %v4586_v48  ;;  %v1359_v29 = vrot.slane %v4796_v15, %v4589_v49 }
 0x243   : > { %v3411_v12 = vcombine.low %v3403_v31, %v3410_v34  ;;  %v1363_v5 = vrot.slane %v4796_v15, %v4592_v54  ;;  %v1367_v14 = vrot.slane %v4796_v15, %v4595_v59  ;;  %v2530_v7 = vcombine.low %v1339_v61, %v1343_v0 }
 0x244   : > { %v3445_v8 = vcombine.low %v3436_v1, %v3443_v4  ;;  %v3452_v16 = vrot.slane %v3444_v10, %v4598_v60  ;;  %v2531_v17 = vcombine.low %v1347_v18, %v1351_v2  ;;  %v2532_v20 = vcombine.low %v1355_v6, %v1359_v29 }
 0x245   : > { %3690 = vperm.xlu0 %4165, %v3411_v12   ;;  %v2533_v19 = vcombine.low %v1363_v5, %v1367_v14  ;;  %v2540_v32 = vrot.slane %v2530_v7, %v4598_v60  ;;  %v1947_v52 = vrot.slane %v4898_v9, %v4572_v33  ;;  %v1951_v25 = vrot.slane %v4898_v9, %v4575_v36 }
 0x246   : > { %v3459_v26 = vrot.slane %v3445_v8, %v4598_v60  ;;  %v2547_v15 = vrot.slane %v2531_v17, %v4598_v60  ;;  %v2554_v27 = vrot.slane %v2532_v20, %v4598_v60  ;;  %v1955_v41 = vrot.slane %v4898_v9, %v4578_v37 }
 0x247   : > { %v2561_v13 = vrot.slane %v2533_v19, %v4598_v60  ;;  %v1959_v23 = vrot.slane %v4898_v9, %v4583_v47  ;;  %v1963_v28 = vrot.slane %v4898_v9, %v4586_v48  ;;  %v1967_v30 = vrot.slane %v4898_v9, %v4589_v49 }
 0x248   : > { %v3460_v55 = vcombine.low %v3452_v16, %v3459_v26  ;;  %v2562_v35 = vcombine.low %v2540_v32, %v2547_v15  ;;  %v1971_v57 = vrot.slane %v4898_v9, %v4592_v54  ;;  %v1975_v39 = vrot.slane %v4898_v9, %v4595_v59 }
 0x249   : > { %v2563_v40 = vcombine.low %v2554_v27, %v2561_v13  ;;  %v3461_v43 = vcombine.low %v1947_v52, %v1951_v25  ;;  %v3462_v44 = vcombine.low %v1955_v41, %v1959_v23  ;;  %v3463_v45 = vcombine.low %v1963_v28, %v1967_v30 }
 0x24a   : > { %3693 = vperm.xlu0 %4165, %v3460_v55   ;;  %v2570_v46 = vrot.slane %v2562_v35, %v4598_v60  ;;  %v3464_v50 = vcombine.low %v1971_v57, %v1975_v39  ;;  %v1371_v31 = vrot.slane %v4840_v24, %v4572_v33  ;;  %v1375_v56 = vrot.slane %v4840_v24, %v4575_v36 }
 0x24b   : > { %v2577_v61 = vrot.slane %v2563_v40, %v4598_v60  ;;  %v3471_v62 = vrot.slane %v3461_v43, %v4598_v60  ;;  %v3478_v9 = vrot.slane %v3462_v44, %v4598_v60  ;;  %v3485_v42 = vrot.slane %v3463_v45, %v4598_v60 }
 0x24c   : > { %v3492_v63 = vrot.slane %v3464_v50, %v4598_v60  ;;  %v1379_v0 = vrot.slane %v4840_v24, %v4578_v37  ;;  %v1383_v34 = vrot.slane %v4840_v24, %v4583_v47  ;;  %v1387_v1 = vrot.slane %v4840_v24, %v4586_v48 }
 0x24d   : > { %v2578_v18 = vcombine.low %v2570_v46, %v2577_v61  ;;  %v3493_v2 = vcombine.low %v3471_v62, %v3478_v9  ;;  %v1391_v4 = vrot.slane %v4840_v24, %v4589_v49  ;;  %v1395_v10 = vrot.slane %v4840_v24, %v4592_v54 }
 0x24e   : > { %v3494_v6 = vcombine.low %v3485_v42, %v3492_v63  ;;  %v1399_v29 = vrot.slane %v4840_v24, %v4595_v59  ;;  %v2579_v12 = vcombine.low %v1371_v31, %v1375_v56  ;;  %v2580_v5 = vcombine.low %v1379_v0, %v1383_v34 }
 0x24f   : > { %3639 = vperm.xlu1 %4166, %v2578_v18   ;;  %v3501_v14 = vrot.slane %v3493_v2, %v4598_v60  ;;  %v2581_v7 = vcombine.low %v1387_v1, %v1391_v4  ;;  %v1979_v8 = vrot.slane %v4922_v21, %v4572_v33  ;;  %v1983_v16 = vrot.slane %v4922_v21, %v4575_v36 }
 0x250   : > { %v3508_v17 = vrot.slane %v3494_v6, %v4598_v60  ;;  %v2582_v20 = vcombine.low %v1395_v10, %v1399_v29  ;;  %v2589_v19 = vrot.slane %v2579_v12, %v4598_v60  ;;  %v2596_v32 = vrot.slane %v2580_v5, %v4598_v60 }
 0x251   : > { %v2603_v24 = vrot.slane %v2581_v7, %v4598_v60  ;;  %v1987_v52 = vrot.slane %v4922_v21, %v4578_v37  ;;  %v1991_v25 = vrot.slane %v4922_v21, %v4583_v47  ;;  %v1995_v26 = vrot.slane %v4922_v21, %v4586_v48 }
 0x252   : > { %v3509_v15 = vcombine.low %v3501_v14, %v3508_v17  ;;  %v2610_v27 = vrot.slane %v2582_v20, %v4598_v60  ;;  %v2611_v41 = vcombine.low %v2589_v19, %v2596_v32  ;;  %v1999_v13 = vrot.slane %v4922_v21, %v4589_v49 }
 0x253   : > { %v2003_v23 = vrot.slane %v4922_v21, %v4592_v54  ;;  %v2007_v28 = vrot.slane %v4922_v21, %v4595_v59  ;;  %v3510_v30 = vcombine.low %v1979_v8, %v1983_v16  ;;  %v3511_v55 = vcombine.low %v1987_v52, %v1991_v25 }
 0x254   : > { %3696 = vperm.xlu0 %4165, %v3509_v15   ;;  %v2612_v35 = vcombine.low %v2603_v24, %v2610_v27  ;;  %v2619_v57 = vrot.slane %v2611_v41, %v4598_v60  ;;  %v3512_v39 = vcombine.low %v1995_v26, %v1999_v13  ;;  %v1403_v40 = vrot.slane %v4892_v3, %v4572_v33 }
 0x255   : > { %v3513_v43 = vcombine.low %v2003_v23, %v2007_v28  ;;  %v3520_v44 = vrot.slane %v3510_v30, %v4598_v60  ;;  %v3527_v45 = vrot.slane %v3511_v55, %v4598_v60  ;;  %v1407_v46 = vrot.slane %v4892_v3, %v4575_v36 }
 0x256   : > { %v2626_v21 = vrot.slane %v2612_v35, %v4598_v60  ;;  %v3534_v50 = vrot.slane %v3512_v39, %v4598_v60  ;;  %v1411_v31 = vrot.slane %v4892_v3, %v4578_v37  ;;  %v1415_v56 = vrot.slane %v4892_v3, %v4583_v47 }
 0x257   : > { %v3541_v61 = vrot.slane %v3513_v43, %v4598_v60  ;;  %v3542_v62 = vcombine.low %v3520_v44, %v3527_v45  ;;  %v1419_v9 = vrot.slane %v4892_v3, %v4586_v48  ;;  %v1423_v42 = vrot.slane %v4892_v3, %v4589_v49 }
 0x258   : > { %v2627_v63 = vcombine.low %v2619_v57, %v2626_v21  ;;  %v1427_v0 = vrot.slane %v4892_v3, %v4592_v54  ;;  %v1431_v34 = vrot.slane %v4892_v3, %v4595_v59  ;;  %v2628_v1 = vcombine.low %v1403_v40, %v1407_v46 }
 0x259   : > { %v3543_v18 = vcombine.low %v3534_v50, %v3541_v61  ;;  %v3550_v2 = vrot.slane %v3542_v62, %v4598_v60  ;;  %v2629_v4 = vcombine.low %v1411_v31, %v1415_v56  ;;  %v2630_v10 = vcombine.low %v1419_v9, %v1423_v42 }
 0x25a   : > { %3642 = vperm.xlu1 %4166, %v2627_v63   ;;  %v2631_v6 = vcombine.low %v1427_v0, %v1431_v34  ;;  %v2638_v29 = vrot.slane %v2628_v1, %v4598_v60  ;;  %v2011_v12 = vrot.slane %v4963_v53, %v4572_v33  ;;  %v2015_v5 = vrot.slane %v4963_v53, %v4575_v36 }
 0x25b   : > { %v3557_v14 = vrot.slane %v3543_v18, %v4598_v60  ;;  %v2645_v3 = vrot.slane %v2629_v4, %v4598_v60  ;;  %v2652_v7 = vrot.slane %v2630_v10, %v4598_v60  ;;  %v2019_v8 = vrot.slane %v4963_v53, %v4578_v37 }
 0x25c   : > { %v2659_v16 = vrot.slane %v2631_v6, %v4598_v60  ;;  %v2023_v17 = vrot.slane %v4963_v53, %v4583_v47  ;;  %v2027_v20 = vrot.slane %v4963_v53, %v4586_v48  ;;  %v2031_v19 = vrot.slane %v4963_v53, %v4589_v49 }
 0x25d   : > { %v3558_v32 = vcombine.low %v3550_v2, %v3557_v14  ;;  %v2660_v24 = vcombine.low %v2638_v29, %v2645_v3  ;;  %v2035_v52 = vrot.slane %v4963_v53, %v4592_v54  ;;  %v2039_v25 = vrot.slane %v4963_v53, %v4595_v59 }
 0x25e   : > { %v2661_v26 = vcombine.low %v2652_v7, %v2659_v16  ;;  %v3559_v15 = vcombine.low %v2011_v12, %v2015_v5  ;;  %v3560_v27 = vcombine.low %v2019_v8, %v2023_v17  ;;  %v3561_v41 = vcombine.low %v2027_v20, %v2031_v19 }
 0x25f   : > { %3699 = vperm.xlu0 %4165, %v3558_v32   ;;  %v2668_v13 = vrot.slane %v2660_v24, %v4598_v60  ;;  %v3562_v23 = vcombine.low %v2035_v52, %v2039_v25  ;;  %v1435_v28 = vrot.slane %v4916_v58, %v4572_v33  ;;  %v1439_v30 = vrot.slane %v4916_v58, %v4575_v36 }
 0x260   : > { %v2675_v55 = vrot.slane %v2661_v26, %v4598_v60  ;;  %v3569_v35 = vrot.slane %v3559_v15, %v4598_v60  ;;  %v3576_v53 = vrot.slane %v3560_v27, %v4598_v60  ;;  %v3583_v57 = vrot.slane %v3561_v41, %v4598_v60 }
 0x261   : > { %v3590_v39 = vrot.slane %v3562_v23, %v4598_v60  ;;  %v1443_v40 = vrot.slane %v4916_v58, %v4578_v37  ;;  %v1447_v43 = vrot.slane %v4916_v58, %v4583_v47  ;;  %v1451_v44 = vrot.slane %v4916_v58, %v4586_v48 }
 0x262   : > { %v2676_v45 = vcombine.low %v2668_v13, %v2675_v55  ;;  %v3591_v46 = vcombine.low %v3569_v35, %v3576_v53  ;;  %v1455_v21 = vrot.slane %v4916_v58, %v4589_v49  ;;  %v1459_v50 = vrot.slane %v4916_v58, %v4592_v54 }
 0x263   : > { %v3592_v31 = vcombine.low %v3583_v57, %v3590_v39  ;;  %v1463_v56 = vrot.slane %v4916_v58, %v4595_v59  ;;  %v2677_v61 = vcombine.low %v1435_v28, %v1439_v30  ;;  %v2678_v62 = vcombine.low %v1443_v40, %v1447_v43 }
 0x264   : > { %3645 = vperm.xlu1 %4166, %v2676_v45   ;;  %v3599_v9 = vrot.slane %v3591_v46, %v4598_v60  ;;  %v2679_v42 = vcombine.low %v1451_v44, %v1455_v21  ;;  %v1467_v63 = vrot.slane %v4958_v38, %v4572_v33  ;;  %v1471_v0 = vrot.slane %v4958_v38, %v4575_v36 }
 0x265   : > { %v3606_v34 = vrot.slane %v3592_v31, %v4598_v60  ;;  %v2680_v1 = vcombine.low %v1459_v50, %v1463_v56  ;;  %v2687_v18 = vrot.slane %v2677_v61, %v4598_v60  ;;  %v2694_v2 = vrot.slane %v2678_v62, %v4598_v60  ;;  %v3658_v50 = vpop.permute.xlu1 %3657 }
 0x266   : > { %v2701_v58 = vrot.slane %v2679_v42, %v4598_v60  ;;  %v1475_v4 = vrot.slane %v4958_v38, %v4578_v37  ;;  %v1479_v10 = vrot.slane %v4958_v38, %v4583_v47  ;;  %v1483_v6 = vrot.slane %v4958_v38, %v4586_v48  ;;  %v3610_v42 = vpop.permute.xlu0 %3609 }
 0x267   : > { %v3607_v29 = vcombine.low %v3599_v9, %v3606_v34  ;;  %v2708_v12 = vrot.slane %v2680_v1, %v4598_v60  ;;  %v2709_v5 = vcombine.low %v2687_v18, %v2694_v2  ;;  %v1487_v14 = vrot.slane %v4958_v38, %v4589_v49 }
 0x268   : > { %v1491_v3 = vrot.slane %v4958_v38, %v4592_v54  ;;  %v1495_v7 = vrot.slane %v4958_v38, %v4595_v59  ;;  %v2726_v8 = vcombine.low %v1467_v63, %v1471_v0  ;;  %v2727_v16 = vcombine.low %v1475_v4, %v1479_v10 }
 0x269   : > { %3702 = vperm.xlu0 %4165, %v3607_v29   ;;  %v2710_v17 = vcombine.low %v2701_v58, %v2708_v12  ;;  %v2717_v20 = vrot.slane %v2709_v5, %v4598_v60  ;;  %v2728_v19 = vcombine.low %v1483_v6, %v1487_v14  ;;  %v1499_v32 = vrot.slane %v5011_v51, %v4572_v33  ;;  %v5377_v31 = vpop.permute.xlu1 %3612 }
 0x26a   : > { %v2729_v24 = vcombine.low %v1491_v3, %v1495_v7  ;;  %v2736_v52 = vrot.slane %v2726_v8, %v4598_v60  ;;  %v2743_v25 = vrot.slane %v2727_v16, %v4598_v60  ;;  %v1503_v26 = vrot.slane %v5011_v51, %v4575_v36  ;;  %v3661_v0 = vpop.permute.xlu0 %3660 }
 0x26b   : > { %v2724_v38 = vrot.slane %v2710_v17, %v4598_v60  ;;  %v2750_v15 = vrot.slane %v2728_v19, %v4598_v60  ;;  %v1507_v27 = vrot.slane %v5011_v51, %v4578_v37  ;;  %v1511_v41 = vrot.slane %v5011_v51, %v4583_v47 }
 0x26c   : > { %v2757_v33 = vrot.slane %v2729_v24, %v4598_v60  ;;  %v2758_v13 = vcombine.low %v2736_v52, %v2743_v25  ;;  %v1515_v23 = vrot.slane %v5011_v51, %v4586_v48  ;;  %v1519_v28 = vrot.slane %v5011_v51, %v4589_v49 }
 0x26d   : > { %v2725_v36 = vcombine.low %v2717_v20, %v2724_v38  ;;  %v1523_v30 = vrot.slane %v5011_v51, %v4592_v54  ;;  %v1527_v55 = vrot.slane %v5011_v51, %v4595_v59  ;;  %v2775_v37 = vcombine.low %v1499_v32, %v1503_v26  ;;  %v5379_v56 = vpop.permute.xlu1 %3615 }
 0x26e   : > { %v2759_v35 = vcombine.low %v2750_v15, %v2757_v33  ;;  %v2766_v47 = vrot.slane %v2758_v13, %v4598_v60  ;;  %v2776_v53 = vcombine.low %v1507_v27, %v1511_v41  ;;  %v2777_v57 = vcombine.low %v1515_v23, %v1519_v28  ;;  %v3667_v1 = vpop.permute.xlu0 %3666 }
 0x26f   : > { %3648 = vperm.xlu1 %4166, %v2725_v36   ;;  %v2778_v39 = vcombine.low %v1523_v30, %v1527_v55  ;;  %v2785_v48 = vrot.slane %v2775_v37, %v4598_v60  ;;  %v5400_v5 = vand.u32 127, %v1016_v11 }
 0x270   : > { %v2773_v40 = vrot.slane %v2759_v35, %v4598_v60  ;;  %v2792_v49 = vrot.slane %v2776_v53, %v4598_v60  ;;  %v2799_v43 = vrot.slane %v2777_v57, %v4598_v60 }
 0x271   : > { %v2806_v54 = vrot.slane %v2778_v39, %v4598_v60  ;;  %v3664_v61 = vpop.permute.xlu1 %3663  ;;  %v3710_v14 = vadd.s32 4294967288, %v5400_v5  ;;  %v3717_v3 = vadd.s32 4294967280, %v5400_v5  ;;  %v3724_v16 = vadd.s32 4294967272, %v5400_v5 }
 0x272   : > { %v2774_v44 = vcombine.low %v2766_v47, %v2773_v40  ;;  %v2807_v59 = vcombine.low %v2785_v48, %v2792_v49  ;;  %v3708_v17 = vsub.s32 %v5400_v5, %v4567_v22  ;;  %v3731_v32 = vadd.s32 4294967264, %v5400_v5 }
 0x273   : > { %v2808_v51 = vcombine.low %v2799_v43, %v2806_v54  ;;  %v3713_v20 = vsub.s32 %v3710_v14, %v4567_v22  ;;  %v3720_v19 = vsub.s32 %v3717_v3, %v4567_v22  ;;  %v3727_v52 = vsub.s32 %v3724_v16, %v4567_v22 }
 0x274   : > { %3651 = vperm.xlu1 %4166, %v2774_v44   ;;  %v2815_v45 = vrot.slane %v2807_v59, %v4598_v60  ;;  %v3738_v25 = vadd.s32 4294967256, %v5400_v5  ;;  %v3818_v27 = vrot.slane %v3658_v50, %v3708_v17  ;;  %v3734_v41 = vsub.s32 %v3731_v32, %v4567_v22 }
 0x275   : > { %v2822_v46 = vrot.slane %v2808_v51, %v4598_v60  ;;  %v5381_v62 = vpop.permute.xlu1 %3618  ;;  %v3822_v24 = vrot.slane %v3661_v0, %v3713_v20  ;;  %v3827_v26 = vrot.slane %v3664_v61, %v3720_v19  ;;  %v3745_v33 = vadd.s32 4294967248, %v5400_v5 }
 0x276   : > { %v3832_v23 = vrot.slane %v3667_v1, %v3727_v52  ;;  %v3741_v28 = vsub.s32 %v3738_v25, %v4567_v22  ;;  %v3752_v55 = vadd.s32 4294967240, %v5400_v5  ;;  %v3759_v35 = vadd.s32 4294967232, %v5400_v5 }
 0x277   : > { %v2823_v21 = vcombine.low %v2815_v45, %v2822_v46  ;;  %v3823_v13 = vsel %vm3715_vm0, %v3822_v24, %v3818_v27  ;;  %v3748_v37 = vsub.s32 %v3745_v33, %v4567_v22  ;;  %v3714_v57 = vrot.slane %v5377_v31, %v3713_v20 }
 0x278   : > { %v3828_v36 = vsel %vm3722_vm1, %v3827_v26, %v3823_v13  ;;  %v3709_v43 = vrot.slane %v3610_v42, %v3708_v17  ;;  %v3721_v54 = vrot.slane %v5379_v56, %v3720_v19  ;;  %v3755_v44 = vsub.s32 %v3752_v55, %v4567_v22 }
 0x279   : > { %3654 = vperm.xlu1 %4166, %v2823_v21   ;;  %v3833_v39 = vsel %vm3729_vm2, %v3832_v23, %v3828_v36  ;;  %v3728_v59 = vrot.slane %v5381_v62, %v3727_v52  ;;  %v3762_v51 = vsub.s32 %v3759_v35, %v4567_v22  ;;  %v3766_v21 = vadd.s32 4294967224, %v5400_v5 }
 0x27a   : > { %v5383_v9 = vpop.permute.xlu1 %3621  ;;  %v3716_v45 = vsel %vm3715_vm0, %v3714_v57, %v3709_v43  ;;  %v3773_v31 = vadd.s32 4294967216, %v5400_v5  ;;  %v3780_v3 = vadd.s32 4294967208, %v5400_v5 }
 0x27b   : > { %v3723_v62 = vsel %vm3722_vm1, %v3721_v54, %v3716_v45  ;;  %v3735_v1 = vrot.slane %v5383_v9, %v3734_v41 }
 0x27c   : > { %v3730_v0 = vsel %vm3729_vm2, %v3728_v59, %v3723_v62  ;;  %v3776_v16 = vsub.s32 %v3773_v31, %v4567_v22 }
 0x27d   : > { %v3737_v19 = vsel %vm3736_vm3, %v3735_v1, %v3730_v0 }
 0x282   : > { %v3673_v2 = vpop.permute.xlu0 %3672 }
 0x283   : > { %v3842_v48 = vrot.slane %v3673_v2, %v3741_v28 }
 0x288   : > { %v3670_v63 = vpop.permute.xlu1 %3669 }
 0x289   : > { %v3837_v30 = vrot.slane %v3670_v63, %v3734_v41 }
 0x28b   : > { %v3838_v40 = vsel %vm3736_vm3, %v3837_v30, %v3833_v39 }
 0x28c   : > { %v3843_v46 = vsel %vm3743_vm4, %v3842_v48, %v3838_v40 }
 0x28f   : > { %v5385_v34 = vpop.permute.xlu1 %3624 }
 0x290   : > { %v3742_v2 = vrot.slane %v5385_v34, %v3741_v28  ;;  %v3794_v34 = vadd.s32 4294967192, %v5400_v5 }
 0x292   : > { %v3744_v25 = vsel %vm3743_vm4, %v3742_v2, %v3737_v19  ;;  %v3797_v13 = vsub.s32 %v3794_v34, %v4567_v22 }
 0x294   : > { %v5389_v58 = vpop.permute.xlu0 %3678 }
 0x295   : > { %v3852_v63 = vrot.slane %v5389_v58, %v3755_v44  ;;  %v3787_v58 = vadd.s32 4294967200, %v5400_v5 }
 0x297   : > { %v3790_v33 = vsub.s32 %v3787_v58, %v4567_v22 }
 0x299   : > { %v5387_v18 = vpop.permute.xlu1 %3627 }
 0x29f   : > { %v3676_v4 = vpop.permute.xlu1 %3675 }
 0x2a0   : > { %v3847_v49 = vrot.slane %v3676_v4, %v3748_v37  ;;  %v3769_v4 = vsub.s32 %v3766_v21, %v4567_v22 }
 0x2a2   : > { %v3848_v50 = vsel %vm3750_vm5, %v3847_v49, %v3843_v46 }
 0x2a3   : > { %v3853_v14 = vsel %vm3757_vm6, %v3852_v63, %v3848_v50 }
 0x2a4   : > { %v5391_v10 = vpop.permute.xlu0 %3636 }
 0x2a5   : > { %v3770_v30 = vrot.slane %v5391_v10, %v3769_v4 }
 0x2a9   : > { %v5393_v6 = vpop.permute.xlu1 %3630 }
 0x2aa   : > { %v3756_v20 = vrot.slane %v5393_v6, %v3755_v44  ;;  %v3783_v6 = vsub.s32 %v3780_v3, %v4567_v22 }
 0x2af   : > { %v5395_v29 = vpop.permute.xlu0 %3684 }
 0x2b0   : > { %v3862_v9 = vrot.slane %v5395_v29, %v3769_v4  ;;  %v3808_v29 = vadd.s32 4294967176, %v5400_v5 }
 0x2b4   : > { %v5397_v12 = vpop.permute.xlu1 %3633 }
 0x2b5   : > { %v3763_v32 = vrot.slane %v5397_v12, %v3762_v51 }
 0x2b9   : > { %v5404_v7 = vpop.permute.xlu0 %3687 }
 0x2ba   : > { %v3867_v41 = vrot.slane %v5404_v7, %v3776_v16 }
 0x2be   : > { %v5406_v8 = vpop.permute.xlu1 %3681 }
 0x2bf   : > { %v3857_v56 = vrot.slane %v5406_v8, %v3762_v51  ;;  %v3749_v8 = vrot.slane %v5387_v18, %v3748_v37  ;;  %v3801_v18 = vadd.s32 4294967184, %v5400_v5  ;;  %v3811_v37 = vsub.s32 %v3808_v29, %v4567_v22 }
 0x2c1   : > { %v3858_v17 = vsel %vm3764_vm7, %v3857_v56, %v3853_v14  ;;  %v3751_v27 = vsel %vm3750_vm5, %v3749_v8, %v3744_v25  ;;  %v3804_v5 = vsub.s32 %v3801_v18, %v4567_v22 }
 0x2c2   : > { %v3863_v26 = vsel %vm3771_vm8, %v3862_v9, %v3858_v17  ;;  %v3758_v12 = vsel %vm3757_vm6, %v3756_v20, %v3751_v27 }
 0x2c3   : > { %v3765_v23 = vsel %vm3764_vm7, %v3763_v32, %v3758_v12  ;;  %v3868_v28 = vsel %vm3778_vm9, %v3867_v41, %v3863_v26 }
 0x2c4   : > { %v5416_v38 = vpop.permute.xlu0 %3690  ;;  %v3772_v40 = vsel %vm3771_vm8, %v3770_v30, %v3765_v23 }
 0x2c5   : > { %v3872_v7 = vrot.slane %v5416_v38, %v3783_v6 }
 0x2c9   : > { %v5428_v47 = vpop.permute.xlu0 %3693 }
 0x2ca   : > { %v3877_v57 = vrot.slane %v5428_v47, %v3790_v33 }
 0x2ce   : > { %v5418_v15 = vpop.permute.xlu1 %3639 }
 0x2cf   : > { %v3777_v36 = vrot.slane %v5418_v15, %v3776_v16  ;;  %v3873_v15 = vsel %vm3785_vm10, %v3872_v7, %v3868_v28 }
 0x2d0   : > { %v3878_v54 = vsel %vm3792_vm11, %v3877_v57, %v3873_v15 }
 0x2d3   : > { %v5445_v61 = vpop.permute.xlu0 %3696 }
 0x2d4   : > { %v3882_v10 = vrot.slane %v5445_v61, %v3797_v13 }
 0x2d6   : > { %v3883_v51 = vsel %vm3799_vm12, %v3882_v10, %v3878_v54 }
 0x2d9   : > { %v5430_v53 = vpop.permute.xlu1 %3642 }
 0x2da   : > { %v3784_v55 = vrot.slane %v5430_v53, %v3783_v6  ;;  %v3779_v53 = vsel %vm3778_vm9, %v3777_v36, %v3772_v40 }
 0x2dc   : > { %v3786_v43 = vsel %vm3785_vm10, %v3784_v55, %v3779_v53 }
 0x2de   : > { %v3700_v24 = vpop.permute.xlu0 %3699 }
 0x2df   : > { %v3887_v22 = vrot.slane %v3700_v24, %v3804_v5 }
 0x2e1   : > { %v3888_v21 = vsel %vm3806_vm13, %v3887_v22, %v3883_v51 }
 0x2e3   : > { %v5447_v42 = vpop.permute.xlu1 %3645 }
 0x2e4   : > { %v3791_v39 = vrot.slane %v5447_v42, %v3790_v33 }
 0x2e6   : > { %v3793_v44 = vsel %vm3792_vm11, %v3791_v39, %v3786_v43 }
 0x2e8   : > { %v3703_v48 = vpop.permute.xlu0 %3702 }
 0x2e9   : > { %v3892_v47 = vrot.slane %v3703_v48, %v3811_v37 }
 0x2eb   : > { %v3893_v31 = vsel %vm3813_vm14, %v3892_v47, %v3888_v21 }
 0x2ee   : > { %v3649_v52 = vpop.permute.xlu1 %3648 }
 0x2ef   : > { %v3798_v38 = vrot.slane %v3649_v52, %v3797_v13 }
 0x2f1   : > { %v3800_v45 = vsel %vm3799_vm12, %v3798_v38, %v3793_v44 }
 0x2f3   : > { %v3652_v35 = vpop.permute.xlu1 %3651 }
 0x2f4   : > { %v3805_v49 = vrot.slane %v3652_v35, %v3804_v5 }
 0x2f6   : > { %v3807_v50 = vsel %vm3806_vm13, %v3805_v49, %v3800_v45 }
 0x2f8   : > { %v3655_v59 = vpop.permute.xlu1 %3654 }
 0x2f9   : > { %v3812_v46 = vrot.slane %v3655_v59, %v3811_v37 }
 0x2fb   : > { %v3814_v56 = vsel %vm3813_vm14, %v3812_v46, %v3807_v50 }
 0x2fc   : > { %v3894_v61 = vcombine.low %v3814_v56, %v3893_v31 }
 0x2fe   : > { %v3901_v42 = vrot.slane %v3894_v61, %v4598_v60 }
 0x300   : > { %v3908_v62 = vrot.slane %v3901_v42, %v4598_v60 }
 0x302   : > { %3914 = vst.msk [vmem:[%s228_s16] sm:$0x3] %vm3912_vm15, %v3908_v62 }
 0x303 PF: > { %s16_s20 = sadd.s32 1, %s4317_s20  }
 0x304   : > { %p13_p5 = scmp.ge.s32.totalorder %s16_s20, 4  }
 0x306   :  { %15 = sbr.rel (!%p13_p5) target bundleno = 2 (0x2), region = 70 }

</bundles_post_ra>
